<compile_context>
chip_gen: v7x
topology: tpu7x:2x2x1
jax: 0.10.0
libtpu: 0.0.40
codegen_flags: <defaults>
</compile_context>

<pallas_src>
import functools

import jax
import jax.numpy as jnp
from jax.experimental import pallas as pl
from jax.experimental.pallas import tpu as pltpu


def _round_up(n, m):
    return ((n + m - 1) // m) * m


_VMEM = pl.BlockSpec(memory_space=pltpu.MemorySpace.VMEM)


# ---------------------------------------------------------------------------
# Pallas kernels (grid-less single VMEM block; working sets are tens of KiB)
# ---------------------------------------------------------------------------
def _branch_kernel(x_ref, w_ref, o_ref, *, n_id):
    """o = W @ x; rows [n_id:] additionally pass through ReLU (conv1+BN rows).

    x: (K_pad, N) bf16 with a ones row folded in for the bias column.
    w: (Cout_pad, K_pad) bf16 (BN scale/bias folded).  o: (Cout_pad, N) f32.
    """
    acc = jnp.dot(w_ref[...], x_ref[...], preferred_element_type=jnp.float32)
    # n_id and Cout_pad are multiples of 8 -> both stores are sublane aligned
    # and fully lane dense (N = 512).
    o_ref[:n_id, :] = acc[:n_id].astype(o_ref.dtype)
    o_ref[n_id:, :] = jnp.maximum(acc[n_id:], 0.0).astype(o_ref.dtype)


def branch_conv(x, w, n_id):
    cout, n = w.shape[0], x.shape[1]
    return pl.pallas_call(
        functools.partial(_branch_kernel, n_id=n_id),
        out_shape=jax.ShapeDtypeStruct((cout, n), jnp.float32),
        in_specs=[_VMEM, _VMEM],
        out_specs=_VMEM,
    )(x, w)


def _freq_conv_kernel(x_ref, w_ref, o_ref):
    """Fused FourierUnit + LFU 1x1 conv (+BN+ReLU) behind a block-diag weight."""
    acc = jnp.dot(w_ref[...], x_ref[...], preferred_element_type=jnp.float32)
    o_ref[...] = jnp.maximum(acc, 0.0).astype(o_ref.dtype)


def freq_conv(x, w):
    cout, n = w.shape[0], x.shape[1]
    return pl.pallas_call(
        _freq_conv_kernel,
        out_shape=jax.ShapeDtypeStruct((cout, n), jnp.float32),
        in_specs=[_VMEM, _VMEM],
        out_specs=_VMEM,
    )(x, w)


def _conv2_kernel(x1_ref, fu_ref, lfu_ref, res_ref, w_ref, o_ref):
    """o = res + W @ (x1 + fu + lfu): SpectralTransform.conv2 + l2g residual."""
    s = (x1_ref[...] + fu_ref[...] + lfu_ref[...]).astype(jnp.bfloat16)
    acc = jnp.dot(w_ref[...], s, preferred_element_type=jnp.float32)
    o_ref[...] = (res_ref[...] + acc).astype(o_ref.dtype)


def conv2_sum_residual(x1, fu, lfu, res, w):
    cout, n = w.shape[0], x1.shape[1]
    return pl.pallas_call(
        _conv2_kernel,
        out_shape=jax.ShapeDtypeStruct((cout, n), jnp.float32),
        in_specs=[_VMEM] * 5,
        out_specs=_VMEM,
    )(x1, fu, lfu, res, w)


# ---------------------------------------------------------------------------
# FFC forward (channels-first (C, B*H*W) layout between kernels)
# ---------------------------------------------------------------------------
def ffc_forward(x_l, x_g, p, *, out_cl, out_cg):
    B, in_cl, H, W = x_l.shape
    in_cg = x_g.shape[1]
    cin = in_cl + in_cg
    N = B * H * W
    hid = out_cg // 2
    n_id = out_cl + out_cg  # rows with no activation (l2l+g2l, l2g)

    # ---- fused branch matmul  [l2l|g2l ; l2g|0 ; 0|bn*conv1(+ReLU)] ----
    x = jnp.concatenate([x_l, x_g], axis=1)              # (B, cin, H, W)
    x = x.transpose(1, 0, 2, 3).reshape(cin, N)          # channels x (batch*pixels)
    cin_pad = p["w_branch"].shape[1]
    xin = jnp.concatenate(
        [x, jnp.ones((1, N), x.dtype),                   # bias (ones) row
         jnp.zeros((cin_pad - cin - 1, N), x.dtype)],    # K alignment padding
        axis=0).astype(jnp.bfloat16)
    y = branch_conv(xin, p["w_branch"], n_id)            # (cout_pad, N) f32

    out_xl = y[:out_cl].reshape(out_cl, B, H, W).transpose(1, 0, 2, 3)
    l2g = y[out_cl:n_id]                                  # (out_cg, N)
    x1 = y[n_id:n_id + hid]                               # (hid, N) post conv1+BN+ReLU
    x1_sp = x1.reshape(hid, B, H, W)

    # ---- SpectralTransform: FourierUnit + LFU frequency-domain convs ----
    # TODO(synk): rfft2/irfft2 have no Pallas primitive; they run as XLA FFTs.
    fu_f = jnp.fft.rfftn(x1_sp, axes=(-2, -1), norm="ortho")     # (hid,B,H,Wh) c64
    Wh = fu_f.shape[-1]
    # channel order [c0_re, c0_im, c1_re, ...] matches torch's permute/view
    fu_in = jnp.stack((fu_f.real, fu_f.imag), axis=1).reshape(2 * hid, B * H * Wh)

    xs = x1_sp[: hid // 4]                                # LFU spatial 2x2 fold
    xs = jnp.concatenate(jnp.split(xs, 2, axis=2), axis=0)
    xs = jnp.concatenate(jnp.split(xs, 2, axis=3), axis=0)       # (hid,B,H/2,W/2)
    lf_f = jnp.fft.rfftn(xs, axes=(-2, -1), norm="ortho")
    Wh2 = lf_f.shape[-1]
    lf_in = jnp.stack((lf_f.real, lf_f.imag), axis=1).reshape(
        2 * hid, B * (H // 2) * Wh2)

    # Block-diagonal fused FU/LFU conv; pad pixel axes to a common lane-dense
    # width (multiple of 128) and append the bias ones row + K padding.
    n_fu, n_lf = fu_in.shape[1], lf_in.shape[1]
    n_pad = _round_up(max(n_fu, n_lf), 128)
    fin_pad = p["w_freq"].shape[1]
    xfreq = jnp.concatenate(
        [jnp.pad(fu_in, ((0, 0), (0, n_pad - n_fu))),
         jnp.pad(lf_in, ((0, 0), (0, n_pad - n_lf))),
         jnp.ones((1, n_pad), fu_in.dtype),
         jnp.zeros((fin_pad - 4 * hid - 1, n_pad), fu_in.dtype)],
        axis=0).astype(jnp.bfloat16)
    yfreq = freq_conv(xfreq, p["w_freq"])                 # (4*hid, n_pad) f32

    fu_y = yfreq[: 2 * hid, :n_fu].reshape(hid, 2, B, H, Wh)
    fu = jnp.fft.irfftn(jax.lax.complex(fu_y[:, 0], fu_y[:, 1]),
                        s=(H, W), axes=(-2, -1), norm="ortho")    # (hid,B,H,W)
    lf_y = yfreq[2 * hid:, :n_lf].reshape(hid, 2, B, H // 2, Wh2)
    lfu = jnp.fft.irfftn(jax.lax.complex(lf_y[:, 0], lf_y[:, 1]),
                         s=(H // 2, W // 2), axes=(-2, -1), norm="ortho")
    # TODO(synk): 2x2 spatial tile kept as one tiny XLA op (see header note).
    lfu = jnp.tile(lfu, (1, 1, 2, 2))                     # (hid,B,H,W)

    # ---- conv2(x1 + fu + lfu) + l2g  (single fused pallas_call) ----
    out_xg = conv2_sum_residual(x1, fu.reshape(hid, N), lfu.reshape(hid, N),
                                l2g, p["w_conv2"])        # (out_cg, N) f32
    out_xg = out_xg.reshape(out_cg, B, H, W).transpose(1, 0, 2, 3)
    return out_xl, out_xg


# ---------------------------------------------------------------------------
# Parameters (shapes from the module __init__) and BN/branch fusion
# ---------------------------------------------------------------------------
def bn_affine(gamma, beta, mean, var, eps=1e-5):
    scale = gamma / jnp.sqrt(var + eps)
    bias = beta - mean * scale
    return scale, bias


def init_ffc_params(key, in_cl, in_cg, out_cl, out_cg):
    """Raw (PyTorch-equivalent) params of a freshly constructed FFC in .eval()."""
    ks = jax.random.split(key, 7)

    def conv_w(k, co, ci):
        bound = 1.0 / jnp.sqrt(jnp.float32(ci))
        return jax.random.uniform(k, (co, ci), jnp.float32, -bound, bound)

    def bn(c):
        return bn_affine(jnp.ones((c,), jnp.float32), jnp.zeros((c,), jnp.float32),
                         jnp.zeros((c,), jnp.float32), jnp.ones((c,), jnp.float32))

    hid = out_cg // 2  # SpectralTransform hidden width
    return {
        "w_l2l": conv_w(ks[0], out_cl, in_cl),
        "w_l2g": conv_w(ks[1], out_cg, in_cl),
        "w_g2l": conv_w(ks[2], out_cl, in_cg),
        "st_conv1_w": conv_w(ks[3], hid, in_cg),
        "st_bn1": bn(hid),
        "fu_conv_w": conv_w(ks[4], hid * 2, hid * 2),
        "fu_bn": bn(hid * 2),
        "lfu_conv_w": conv_w(ks[5], hid * 2, hid * 2),
        "lfu_bn": bn(hid * 2),
        "st_conv2_w": conv_w(ks[6], out_cg, hid),
    }


def fuse_ffc_params(raw, in_cl, in_cg, out_cl, out_cg):
    """Fold BN into weights + bias columns; build padded bf16 fused weights."""
    hid = out_cg // 2
    cin = in_cl + in_cg
    n_id = out_cl + out_cg
    cout_pad = _round_up(n_id + hid, 8)       # 20 -> 24 (unmasked f32 stores)
    cin_pad = _round_up(cin + 1, 8)           # 17 -> 24 (aligned K)
    s1, b1 = raw["st_bn1"]

    # Fused branch weight: [ l2l | g2l | 0 ; l2g | 0 | 0 ; 0 | s1*conv1 | b1 ]
    wb = jnp.zeros((cout_pad, cin_pad), jnp.float32)
    wb = wb.at[:out_cl, :in_cl].set(raw["w_l2l"])
    wb = wb.at[:out_cl, in_cl:cin].set(raw["w_g2l"])
    wb = wb.at[out_cl:n_id, :in_cl].set(raw["w_l2g"])
    wb = wb.at[n_id:n_id + hid, in_cl:cin].set(s1[:, None] * raw["st_conv1_w"])
    wb = wb.at[n_id:n_id + hid, cin].set(b1)

    # Block-diagonal fused FU / LFU weight with bias column.
    fs, fb = raw["fu_bn"]
    ls, lb = raw["lfu_bn"]
    c2 = 2 * hid
    fin_pad = _round_up(2 * c2 + 1, 8)        # 17 -> 24
    wf = jnp.zeros((2 * c2, fin_pad), jnp.float32)
    wf = wf.at[:c2, :c2].set(fs[:, None] * raw["fu_conv_w"])
    wf = wf.at[:c2, 2 * c2].set(fb)
    wf = wf.at[c2:, c2:2 * c2].set(ls[:, None] * raw["lfu_conv_w"])
    wf = wf.at[c2:, 2 * c2].set(lb)

    return {
        "w_branch": wb.astype(jnp.bfloat16),
        "w_freq": wf.astype(jnp.bfloat16),
        "w_conv2": raw["st_conv2_w"].astype(jnp.bfloat16),
    }


# ---------------------------------------------------------------------------
# Pure-JAX (XLA) reference of the same module, for validation
# ---------------------------------------------------------------------------
def _ref_pw(x, w):
    return jnp.einsum("oc,bchw->bohw", w, x, precision=jax.lax.Precision.HIGHEST)


def _ref_bn_relu(x, scale, bias):
    return jnp.maximum(x * scale[None, :, None, None] + bias[None, :, None, None], 0.0)


def _ref_fourier_unit(x, w, scale, bias):
    b, c, h, wd = x.shape
    f = jnp.fft.rfftn(x, axes=(-2, -1), norm="ortho")
    f = jnp.stack((f.real, f.imag), axis=2).reshape(b, 2 * c, h, f.shape[-1])
    f = _ref_bn_relu(_ref_pw(f, w), scale, bias)
    f = f.reshape(b, c, 2, h, -1)
    f = jax.lax.complex(f[:, :, 0], f[:, :, 1])
    return jnp.fft.irfftn(f, s=(h, wd), axes=(-2, -1), norm="ortho")


def ffc_reference(x_l, x_g, raw):
    out_xl = _ref_pw(x_l, raw["w_l2l"]) + _ref_pw(x_g, raw["w_g2l"])
    s1, b1 = raw["st_bn1"]
    x1 = _ref_bn_relu(_ref_pw(x_g, raw["st_conv1_w"]), s1, b1)
    fs, fb = raw["fu_bn"]
    fu = _ref_fourier_unit(x1, raw["fu_conv_w"], fs, fb)
    _, c, _, _ = x1.shape
    xs = x1[:, : c // 4]
    xs = jnp.concatenate(jnp.split(xs, 2, axis=2), axis=1)
    xs = jnp.concatenate(jnp.split(xs, 2, axis=3), axis=1)
    ls, lb = raw["lfu_bn"]
    xs = _ref_fourier_unit(xs, raw["lfu_conv_w"], ls, lb)
    xs = jnp.tile(xs, (1, 1, 2, 2))
    out_xg = _ref_pw(x_l, raw["w_l2g"]) + _ref_pw(x1 + fu + xs, raw["st_conv2_w"])
    return out_xl, out_xg


# ---------------------------------------------------------------------------
if __name__ == "__main__":
    key = jax.random.PRNGKey(0)
    k_xl, k_xg, k_p = jax.random.split(key, 3)

    B, H, W = 2, 16, 16
    in_channels = out_channels = 16
    ratio_gin = ratio_gout = 0.5
    in_cg = int(in_channels * ratio_gin)
    in_cl = in_channels - in_cg
    out_cg = int(out_channels * ratio_gout)
    out_cl = out_channels - out_cg

    x_l = jax.random.normal(k_xl, (B, in_cl, H, W), jnp.float32)
    x_g = jax.random.normal(k_xg, (B, in_cg, H, W), jnp.float32)

    raw = init_ffc_params(k_p, in_cl, in_cg, out_cl, out_cg)
    params = fuse_ffc_params(raw, in_cl, in_cg, out_cl, out_cg)

    fwd = jax.jit(functools.partial(ffc_forward, out_cl=out_cl, out_cg=out_cg))
    out_xl, out_xg = fwd(x_l, x_g, params)
    jax.block_until_ready((out_xl, out_xg))

    assert out_xl.shape == (B, out_cl, H, W), out_xl.shape
    assert out_xg.shape == (B, out_cg, H, W), out_xg.shape
    assert out_xl.dtype == jnp.float32 and out_xg.dtype == jnp.float32
    assert bool(jnp.all(jnp.isfinite(out_xl))) and bool(jnp.all(jnp.isfinite(out_xg)))

    # Validate against a pure-JAX f32 reference of the same (eval-mode) module.
    # Tolerance 5e-2 covers bf16 MXU operands at K <= 24 with f32 accumulation.
    ref_xl, ref_xg = jax.jit(ffc_reference)(x_l, x_g, raw)
    assert bool(jnp.allclose(out_xl, ref_xl, atol=5e-2, rtol=5e-2)), \
        float(jnp.max(jnp.abs(out_xl - ref_xl)))
    assert bool(jnp.allclose(out_xg, ref_xg, atol=5e-2, rtol=5e-2)), \
        float(jnp.max(jnp.abs(out_xg - ref_xg)))

    print("KERNEL_OK")
</pallas_src>

<mosaic_0001>
module attributes {stable_mosaic.version = 11 : i64} {
  func.func @_branch_kernel(%arg0: memref<24x512xbf16, #tpu.memory_space<vmem>>, %arg1: memref<24x24xbf16, #tpu.memory_space<vmem>>, %arg2: memref<24x512xf32, #tpu.memory_space<vmem>>) attributes {dimension_semantics = [], scalar_prefetch = 0 : i64, scratch_operands = 0 : i64, tpu.core_type = #tpu.core_type<tc>} {
    %c0 = arith.constant 0 : index
    %c0_0 = arith.constant 0 : index
    %0 = vector.load %arg1[%c0, %c0_0] : memref<24x24xbf16, #tpu.memory_space<vmem>>, vector<24x24xbf16>
    %c0_1 = arith.constant 0 : index
    %c0_2 = arith.constant 0 : index
    %1 = vector.load %arg0[%c0_1, %c0_2] : memref<24x512xbf16, #tpu.memory_space<vmem>>, vector<24x512xbf16>
    %cst = arith.constant dense<0.000000e+00> : vector<24x512xf32>
    %2 = tpu.matmul %0, %1, %cst {dimension_numbers = #tpu.dot_dimension_numbers<[1], [0], [0], [1], [0, 0, 1, 1], [], []>} : vector<24x24xbf16>, vector<24x512xbf16>, vector<24x512xf32> -> vector<24x512xf32>
    %3 = vector.extract_strided_slice %2 {offsets = [0, 0], sizes = [16, 512], strides = [1, 1]} : vector<24x512xf32> to vector<16x512xf32>
    %c0_3 = arith.constant 0 : index
    %c0_4 = arith.constant 0 : index
    %4 = vector.load %arg2[%c0_3, %c0_4] : memref<24x512xf32, #tpu.memory_space<vmem>>, vector<16x512xf32>
    tpu.vector_store %arg2[%c0_3, %c0_4], %3 {strides = array<i32>} : memref<24x512xf32, #tpu.memory_space<vmem>>, vector<16x512xf32>,
    %5 = vector.extract_strided_slice %2 {offsets = [16, 0], sizes = [8, 512], strides = [1, 1]} : vector<24x512xf32> to vector<8x512xf32>
    %cst_5 = arith.constant 0.000000e+00 : f32
    %6 = vector.broadcast %cst_5 : f32 to vector<8x512xf32>
    %7 = arith.maximumf %5, %6 : vector<8x512xf32>
    %c16 = arith.constant 16 : index
    %c0_6 = arith.constant 0 : index
    %8 = vector.load %arg2[%c16, %c0_6] : memref<24x512xf32, #tpu.memory_space<vmem>>, vector<8x512xf32>
    tpu.vector_store %arg2[%c16, %c0_6], %7 {strides = array<i32>} : memref<24x512xf32, #tpu.memory_space<vmem>>, vector<8x512xf32>,
    return
  }
}

module attributes {stable_mosaic.version = 11 : i64} {
  func.func @_freq_conv_kernel(%arg0: memref<24x384xbf16, #tpu.memory_space<vmem>>, %arg1: memref<16x24xbf16, #tpu.memory_space<vmem>>, %arg2: memref<16x384xf32, #tpu.memory_space<vmem>>) attributes {dimension_semantics = [], scalar_prefetch = 0 : i64, scratch_operands = 0 : i64, tpu.core_type = #tpu.core_type<tc>} {
    %c0 = arith.constant 0 : index
    %c0_0 = arith.constant 0 : index
    %0 = vector.load %arg1[%c0, %c0_0] : memref<16x24xbf16, #tpu.memory_space<vmem>>, vector<16x24xbf16>
    %c0_1 = arith.constant 0 : index
    %c0_2 = arith.constant 0 : index
    %1 = vector.load %arg0[%c0_1, %c0_2] : memref<24x384xbf16, #tpu.memory_space<vmem>>, vector<24x384xbf16>
    %cst = arith.constant dense<0.000000e+00> : vector<16x384xf32>
    %2 = tpu.matmul %0, %1, %cst {dimension_numbers = #tpu.dot_dimension_numbers<[1], [0], [0], [1], [0, 0, 1, 1], [], []>} : vector<16x24xbf16>, vector<24x384xbf16>, vector<16x384xf32> -> vector<16x384xf32>
    %cst_3 = arith.constant 0.000000e+00 : f32
    %3 = vector.broadcast %cst_3 : f32 to vector<16x384xf32>
    %4 = arith.maximumf %2, %3 : vector<16x384xf32>
    %c0_4 = arith.constant 0 : index
    %c0_5 = arith.constant 0 : index
    %5 = vector.load %arg2[%c0_4, %c0_5] : memref<16x384xf32, #tpu.memory_space<vmem>>, vector<16x384xf32>
    tpu.vector_store %arg2[%c0_4, %c0_5], %4 {strides = array<i32>} : memref<16x384xf32, #tpu.memory_space<vmem>>, vector<16x384xf32>,
    return
  }
}

module attributes {stable_mosaic.version = 11 : i64} {
  func.func @_conv2_kernel(%arg0: memref<4x512xf32, #tpu.memory_space<vmem>>, %arg1: memref<4x512xf32, #tpu.memory_space<vmem>>, %arg2: memref<4x512xf32, #tpu.memory_space<vmem>>, %arg3: memref<8x512xf32, #tpu.memory_space<vmem>>, %arg4: memref<8x4xbf16, #tpu.memory_space<vmem>>, %arg5: memref<8x512xf32, #tpu.memory_space<vmem>>) attributes {dimension_semantics = [], scalar_prefetch = 0 : i64, scratch_operands = 0 : i64, tpu.core_type = #tpu.core_type<tc>} {
    %c0 = arith.constant 0 : index
    %c0_0 = arith.constant 0 : index
    %0 = vector.load %arg0[%c0, %c0_0] : memref<4x512xf32, #tpu.memory_space<vmem>>, vector<4x512xf32>
    %c0_1 = arith.constant 0 : index
    %c0_2 = arith.constant 0 : index
    %1 = vector.load %arg1[%c0_1, %c0_2] : memref<4x512xf32, #tpu.memory_space<vmem>>, vector<4x512xf32>
    %2 = arith.addf %0, %1 : vector<4x512xf32>
    %c0_3 = arith.constant 0 : index
    %c0_4 = arith.constant 0 : index
    %3 = vector.load %arg2[%c0_3, %c0_4] : memref<4x512xf32, #tpu.memory_space<vmem>>, vector<4x512xf32>
    %4 = arith.addf %2, %3 : vector<4x512xf32>
    %5 = arith.truncf %4 : vector<4x512xf32> to vector<4x512xbf16>
    %c0_5 = arith.constant 0 : index
    %c0_6 = arith.constant 0 : index
    %6 = vector.load %arg4[%c0_5, %c0_6] : memref<8x4xbf16, #tpu.memory_space<vmem>>, vector<8x4xbf16>
    %cst = arith.constant dense<0.000000e+00> : vector<8x512xf32>
    %7 = tpu.matmul %6, %5, %cst {dimension_numbers = #tpu.dot_dimension_numbers<[1], [0], [0], [1], [0, 0, 1, 1], [], []>} : vector<8x4xbf16>, vector<4x512xbf16>, vector<8x512xf32> -> vector<8x512xf32>
    %c0_7 = arith.constant 0 : index
    %c0_8 = arith.constant 0 : index
    %8 = vector.load %arg3[%c0_7, %c0_8] : memref<8x512xf32, #tpu.memory_space<vmem>>, vector<8x512xf32>
    %9 = arith.addf %8, %7 : vector<8x512xf32>
    %c0_9 = arith.constant 0 : index
    %c0_10 = arith.constant 0 : index
    %10 = vector.load %arg5[%c0_9, %c0_10] : memref<8x512xf32, #tpu.memory_space<vmem>>, vector<8x512xf32>
    tpu.vector_store %arg5[%c0_9, %c0_10], %9 {strides = array<i32>} : memref<8x512xf32, #tpu.memory_space<vmem>>, vector<8x512xf32>,
    return
  }
}

</mosaic_0001>

<bundles_post_ra>
// kernel: ffc_forward.3
= control target key start
LH: loop header
LB: loop body
LE: loop exit
PB: predicated region body
PF: predicated region fallthrough
CT: control target
= control target key end

     0   :  { %v230_v1 = vmov 0   ;;  %vm66_vm0 = vcmask 1043456   ;;  %vm59_vm1 = vcmask 195584   ;;  %s306_s0 = inlined_call_operand.vmem [shape: bf16[24,512], index: 0, kind: input, shape index: {}]   ;;  %s307_s1 = inlined_call_operand.vmem [shape: bf16[24,24], index: 1, kind: input, shape index: {}]   ;;  %s308_s2 = inlined_call_operand.vmem [shape: f32[24,512], index: 2, kind: output, shape index: {}]  }
   0x1   :  { %v218_v0 = vld [vmem:[%s306_s0 + $0x4] ss:$16 sps:$4 sm:$0xff]   ;;  %111 = vmatprep.mubr.bf16.mxu0 %v230_v1  ;;  %162 = vmatprep.mubr.bf16.mxu1 %v230_v1  ;;  %v220_v2 = vld [vmem:[%s306_s0 + $0xc] ss:$16 sps:$4 sm:$0xff]   ;;  %v222_v3 = vld [vmem:[%s306_s0] ss:$16 sps:$4 sm:$0xff]  }
   0x2   :  { %79 = vmatprep.subr.bf16.mxu0 %v218_v0  ;;  %v223_v4 = vld [vmem:[%s306_s0 + $0x8] ss:$16 sps:$4 sm:$0xff]   ;;  %v19_v5 = vld [vmem:[%s306_s0 + $0x20] sm:$0xff]  ;;  %130 = vmatprep.subr.bf16.mxu1 %v220_v2 }
   0x3   :  { %v208_v6 = vcombine.high %v19_v5, %v19_v5  ;;  %v20_v7 = vld [vmem:[%s306_s0 + $0x28] sm:$0xff]  ;;  %v207_v8 = vcombine.low %v19_v5, %v19_v5  ;;  %80 = vmatpush1.bf16.msra.mxu0 %v222_v3  ;;  %131 = vmatpush1.bf16.msra.mxu1 %v223_v4  ;;  %v228_v13 = vld [vmem:[%s307_s1] sm:$0xff]  }
   0x4   :  { %v210_v9 = vcombine.high %v20_v7, %v20_v7  ;;  %v209_v10 = vcombine.low %v20_v7, %v20_v7  ;;  %v229_v14 = vld [vmem:[%s307_s1 + $0x8] ss:$0 sps:$4 sm:$0xff]  }
   0x5   :  { %211 = vmatprep.subr.msk.bf16.mxu0 %vm66_vm0, %v208_v6  ;;  %v68_v11 = vsel %vm66_vm0, %v207_v8, 0 }
   0x6   :  { %214 = vmatprep.subr.msk.bf16.mxu1 %vm66_vm0, %v210_v9  ;;  %v74_v12 = vsel %vm66_vm0, %v209_v10, 0 }
   0x7   :  { %82 = vmatpush1.bf16.msra.mxu0 %v68_v11  ;;  %133 = vmatpush1.bf16.msra.mxu1 %v74_v12 }
   0xa   :  { %212 = vmatmul.mubr.msk.bf16.vlgmr.msra.gmra.mrb[0].mxu0 %vm59_vm1, %v228_v13  ;;  %215 = vmatmul.mubr.msk.bf16.vlgmr.msra.gmra.mrb[0].mxu1 %vm59_vm1, %v228_v13 }
   0xb   :  { %121 = vmatprep.mubr.bf16.mxu0 %v230_v1  ;;  %172 = vmatprep.mubr.bf16.mxu1 %v230_v1 }
  0x12   :  { %213 = vmatmul.mubr.msk.bf16.gmra.mrb[4].mxu0 %vm59_vm1, %v229_v14  ;;  %216 = vmatmul.mubr.msk.bf16.gmra.mrb[4].mxu1 %vm59_vm1, %v229_v14 }
  0xdd   :  { %v113_v15 = vpop.f32.mrb[0].mxu0  ;;  %v164_v16 = vpop.f32.mrb[0].mxu1 }
  0xde   :  { %181 = vst [vmem:[%s308_s2] sm:$0xff] %v113_v15  ;;  %183 = vst [vmem:[%s308_s2 + $0x10] sm:$0xff] %v164_v16  ;;  %v115_v17 = vpop.f32.mrb[1].mxu0  ;;  %v166_v18 = vpop.f32.mrb[1].mxu1 }
  0xdf   :  { %182 = vst [vmem:[%s308_s2 + $0x8] sm:$0xff] %v115_v17  ;;  %184 = vst [vmem:[%s308_s2 + $0x18] sm:$0xff] %v166_v18  ;;  %v117_v19 = vpop.f32.mrb[2].mxu0  ;;  %v168_v20 = vpop.f32.mrb[2].mxu1 }
  0xe0   :  { %185 = vst [vmem:[%s308_s2 + $0x20] sm:$0xff] %v117_v19  ;;  %187 = vst [vmem:[%s308_s2 + $0x30] sm:$0xff] %v168_v20  ;;  %v119_v21 = vpop.f32.mrb[3].mxu0  ;;  %v170_v22 = vpop.f32.mrb[3].mxu1 }
  0xe1   :  { %186 = vst [vmem:[%s308_s2 + $0x28] sm:$0xff] %v119_v21  ;;  %188 = vst [vmem:[%s308_s2 + $0x38] sm:$0xff] %v170_v22 }
  0xe5   :  { %v123_v23 = vpop.f32.mrb[4].mxu0  ;;  %v174_v24 = vpop.f32.mrb[4].mxu1 }
  0xe6   :  { %v189_v25 = vmax.f32 %v123_v23, 0.0  ;;  %v191_v26 = vmax.f32 %v174_v24, 0.0  ;;  %v125_v27 = vpop.f32.mrb[5].mxu0  ;;  %v176_v28 = vpop.f32.mrb[5].mxu1 }
  0xe7   :  { %v190_v29 = vmax.f32 %v125_v27, 0.0  ;;  %v192_v30 = vmax.f32 %v176_v28, 0.0  ;;  %v127_v31 = vpop.f32.mrb[6].mxu0  ;;  %v178_v32 = vpop.f32.mrb[6].mxu1 }
  0xe8   :  { %193 = vst [vmem:[%s308_s2 + $0x40] sm:$0xff] %v189_v25  ;;  %195 = vst [vmem:[%s308_s2 + $0x50] sm:$0xff] %v191_v26  ;;  %v128_v33 = vpop.f32.mrb[7].mxu0  ;;  %v179_v34 = vpop.f32.mrb[7].mxu1 }
  0xe9   :  { %194 = vst [vmem:[%s308_s2 + $0x48] sm:$0xff] %v190_v29  ;;  %196 = vst [vmem:[%s308_s2 + $0x58] sm:$0xff] %v192_v30 }

// kernel: reverse.3
= control target key start
LH: loop header
LB: loop body
LE: loop exit
PB: predicated region body
PF: predicated region fallthrough
CT: control target
= control target key end

     0   :  { %v79_v8 = vld [vmem:[#allocation1 + $0x38] sm:$0xf]  ;;  %v89_v9 = vld [vmem:[#allocation1 + $0x30] sm:$0xf]  ;;  %v99_v10 = vld [vmem:[#allocation1 + $0x28] sm:$0xf]  ;;  %v156_v12 = vlaneseq  ;;  %s487_s0 = inlined_call_operand.vmem [shape: f32[4,2,8,3], index: 0, kind: input, shape index: {}]   ;;  %s488_s1 = inlined_call_operand.vmem [shape: f32[4,2,8,3], index: 1, kind: output, shape index: {}]  }
   0x1   :  { %v18_v0 = vld [vmem:[%s487_s0] sm:$0xf]  ;;  %v20_v1 = vld [vmem:[%s487_s0 + $0x4] sm:$0xf]  ;;  %v22_v2 = vld [vmem:[%s487_s0 + $0x8] sm:$0xf] }
   0x2   :  { %19 = vst [vmem:[#allocation1 + $0x4] sm:$0xf] %v18_v0  ;;  %21 = vst [vmem:[#allocation1 + $0xc] sm:$0xf] %v20_v1  ;;  %v24_v3 = vld [vmem:[%s487_s0 + $0xc] sm:$0xf] }
   0x3   :  { %23 = vst [vmem:[#allocation1 + $0x14] sm:$0xf] %v22_v2  ;;  %v26_v4 = vld [vmem:[%s487_s0 + $0x10] sm:$0xf]  ;;  %v28_v5 = vld [vmem:[%s487_s0 + $0x14] sm:$0xf] }
   0x4   :  { %25 = vst [vmem:[#allocation1 + $0x1c] sm:$0xf] %v24_v3  ;;  %27 = vst [vmem:[#allocation1 + $0x24] sm:$0xf] %v26_v4  ;;  %v30_v6 = vld [vmem:[%s487_s0 + $0x18] sm:$0xf] }
   0x5   :  { %29 = vst [vmem:[#allocation1 + $0x2c] sm:$0xf] %v28_v5  ;;  %v32_v7 = vld [vmem:[%s487_s0 + $0x1c] sm:$0xf]  ;;  %31 = vst [vmem:[#allocation1 + $0x34] sm:$0xf] %v30_v6 }
   0x6   :  { %33 = vst [vmem:[#allocation1 + $0x3c] sm:$0xf] %v32_v7  ;;  %81 = vst [vmem:[#allocation0 + $0x70] sm:$0xf] %v79_v8  ;;  %v109_v11 = vld [vmem:[#allocation1 + $0x20] sm:$0xf] }
   0x7   :  { %91 = vst [vmem:[#allocation0 + $0x60] sm:$0xf] %v89_v9  ;;  %101 = vst [vmem:[#allocation0 + $0x50] sm:$0xf] %v99_v10  ;;  %v119_v13 = vld [vmem:[#allocation1 + $0x18] sm:$0xf] }
   0x8   :  { %111 = vst [vmem:[#allocation0 + $0x40] sm:$0xf] %v109_v11  ;;  %v129_v14 = vld [vmem:[#allocation1 + $0x10] sm:$0xf]  ;;  %v139_v15 = vld [vmem:[#allocation1 + $0x8] sm:$0xf] }
   0x9   :  { %121 = vst [vmem:[#allocation0 + $0x30] sm:$0xf] %v119_v13  ;;  %131 = vst [vmem:[#allocation0 + $0x20] sm:$0xf] %v129_v14  ;;  %v146_v16 = vld [vmem:[#allocation1] sm:$0xf] }
   0xa   :  { %141 = vst [vmem:[#allocation0 + $0x10] sm:$0xf] %v139_v15  ;;  %147 = vst [vmem:[#allocation0] sm:$0xf] %v146_v16  ;;  %v456_v17 = vshrl.u32 %v156_v12, 7 }
   0xb   :  { %v124_v18 = vld [vmem:[#allocation1 + $0x14] sm:$0xf]  ;;  %v134_v19 = vld [vmem:[#allocation1 + $0xc] sm:$0xf]  ;;  %v143_v20 = vld [vmem:[#allocation1 + $0x4] sm:$0xf] }
   0xc   :  { %v94_v21 = vld [vmem:[#allocation1 + $0x2c] sm:$0xf]  ;;  %v104_v22 = vld [vmem:[#allocation1 + $0x24] sm:$0xf]  ;;  %v114_v23 = vld [vmem:[#allocation1 + $0x1c] sm:$0xf] }
   0xd   :  { %126 = vst [vmem:[#allocation0 + $0x28] sm:$0xf] %v124_v18  ;;  %136 = vst [vmem:[#allocation0 + $0x18] sm:$0xf] %v134_v19  ;;  %v74_v24 = vld [vmem:[#allocation1 + $0x3c] sm:$0xf] }
   0xe   :  { %145 = vst [vmem:[#allocation0 + $0x8] sm:$0xf] %v143_v20  ;;  %v84_v25 = vld [vmem:[#allocation1 + $0x34] sm:$0xf]  ;;  %96 = vst [vmem:[#allocation0 + $0x58] sm:$0xf] %v94_v21 }
   0xf   :  { %106 = vst [vmem:[#allocation0 + $0x48] sm:$0xf] %v104_v22  ;;  %116 = vst [vmem:[#allocation0 + $0x38] sm:$0xf] %v114_v23  ;;  %v247_v26 = vld [vmem:[#allocation0 + $0x77] ss:$-1 sm:$0xff] }
  0x10   :  { %76 = vst [vmem:[#allocation0 + $0x78] sm:$0xf] %v74_v24  ;;  %86 = vst [vmem:[#allocation0 + $0x68] sm:$0xf] %v84_v25  ;;  %v205_v27 = vld [vmem:[#allocation0 + $0x47] ss:$-1 sm:$0xff] }
  0x11   :  { %v219_v28 = vld [vmem:[#allocation0 + $0x57] ss:$-1 sm:$0xff]  ;;  %v233_v29 = vld [vmem:[#allocation0 + $0x67] ss:$-1 sm:$0xff]  ;;  %v206_v37 = vrot.slane %v205_v27, 5  ;;  %v248_v41 = vrot.slane %v247_v26, 5 }
  0x12   :  { %v163_v30 = vld [vmem:[#allocation0 + $0x17] ss:$-1 sm:$0xff]  ;;  %v177_v31 = vld [vmem:[#allocation0 + $0x27] ss:$-1 sm:$0xff]  ;;  %v220_v39 = vrot.slane %v219_v28, 5  ;;  %v234_v40 = vrot.slane %v233_v29, 5 }
  0x13   :  { %v191_v32 = vld [vmem:[#allocation0 + $0x37] ss:$-1 sm:$0xff]  ;;  %v149_v33 = vld [vmem:[#allocation0 + $0x7] ss:$-1 sm:$0xff]  ;;  %v164_v34 = vrot.slane %v163_v30, 5  ;;  %v178_v35 = vrot.slane %v177_v31, 5 }
  0x14   :  { %v192_v36 = vrot.slane %v191_v32, 5  ;;  %v150_v38 = vrot.slane %v149_v33, 5  ;;  %vm158_vm0 = vcmp.lt.s32.totalorder %v456_v17, 3  ;;  %207 = vst [vmem:[#allocation2 + $0x20] sm:$0xff] %v206_v37  ;;  %v168_v43 = vld [vmem:[#allocation0 + $0x1f] ss:$-1 sm:$0xff] }
  0x15   :  { %165 = vst [vmem:[#allocation2 + $0x8] sm:$0xff] %v164_v34  ;;  %179 = vst [vmem:[#allocation2 + $0x10] sm:$0xff] %v178_v35  ;;  %v154_v42 = vld [vmem:[#allocation0 + $0xf] ss:$-1 sm:$0xff]  ;;  %v169_v46 = vrot.slane %v168_v43, 5 }
  0x16   :  { %193 = vst [vmem:[#allocation2 + $0x18] sm:$0xff] %v192_v36  ;;  %151 = vst [vmem:[#allocation2] sm:$0xff] %v150_v38  ;;  %v182_v44 = vld [vmem:[#allocation0 + $0x2f] ss:$-1 sm:$0xff]  ;;  %v155_v45 = vrot.slane %v154_v42, 5 }
  0x17   :  { %221 = vst [vmem:[#allocation2 + $0x28] sm:$0xff] %v220_v39  ;;  %235 = vst [vmem:[#allocation2 + $0x30] sm:$0xff] %v234_v40  ;;  %v183_v47 = vrot.slane %v182_v44, 5  ;;  %v196_v48 = vld [vmem:[#allocation0 + $0x3f] ss:$-1 sm:$0xff] }
  0x18   :  { %249 = vst [vmem:[#allocation2 + $0x38] sm:$0xff] %v248_v41  ;;  %v197_v49 = vrot.slane %v196_v48, 5  ;;  %v210_v50 = vld [vmem:[#allocation0 + $0x4f] ss:$-1 sm:$0xff]  ;;  %v224_v51 = vld [vmem:[#allocation0 + $0x5f] ss:$-1 sm:$0xff] }
  0x19   :  { %159 = vst.msk [vmem:[#allocation2] sm:$0xff] %vm158_vm0, %v155_v45  ;;  %173 = vst.msk [vmem:[#allocation2 + $0x8] sm:$0xff] %vm158_vm0, %v169_v46  ;;  %v211_v52 = vrot.slane %v210_v50, 5  ;;  %v225_v53 = vrot.slane %v224_v51, 5  ;;  %v238_v54 = vld [vmem:[#allocation0 + $0x6f] ss:$-1 sm:$0xff] }
  0x1a   :  { %187 = vst.msk [vmem:[#allocation2 + $0x10] sm:$0xff] %vm158_vm0, %v183_v47  ;;  %v252_v55 = vld [vmem:[#allocation0 + $0x7f] ss:$-1 sm:$0xff]  ;;  %201 = vst.msk [vmem:[#allocation2 + $0x18] sm:$0xff] %vm158_vm0, %v197_v49  ;;  %v239_v56 = vrot.slane %v238_v54, 5 }
  0x1b   :  { %v253_v57 = vrot.slane %v252_v55, 5  ;;  %215 = vst.msk [vmem:[#allocation2 + $0x20] sm:$0xff] %vm158_vm0, %v211_v52  ;;  %229 = vst.msk [vmem:[#allocation2 + $0x28] sm:$0xff] %vm158_vm0, %v225_v53 }
  0x1c   :  { %243 = vst.msk [vmem:[#allocation2 + $0x30] sm:$0xff] %vm158_vm0, %v239_v56 }
  0x1d   :  { %257 = vst.msk [vmem:[#allocation2 + $0x38] sm:$0xff] %vm158_vm0, %v253_v57 }
  0x20   :  { %v261_v58 = vld [vmem:[#allocation2] sm:$0xf]  ;;  %v265_v59 = vld [vmem:[#allocation2 + $0x8] sm:$0xf] }
  0x21   :  { %v270_v60 = vld [vmem:[#allocation2 + $0x10] sm:$0xf]  ;;  %263 = vst [vmem:[#allocation3] sm:$0xf] %v261_v58  ;;  %268 = vst [vmem:[#allocation3 + $0x4] sm:$0xf] %v265_v59 }
  0x22   :  { %274 = vst [vmem:[#allocation3 + $0x8] sm:$0xf] %v270_v60  ;;  %v276_v61 = vld [vmem:[#allocation2 + $0x18] sm:$0xf]  ;;  %v282_v62 = vld [vmem:[#allocation2 + $0x20] sm:$0xf] }
  0x23   :  { %280 = vst [vmem:[#allocation3 + $0xc] sm:$0xf] %v276_v61  ;;  %v288_v63 = vld [vmem:[#allocation2 + $0x28] sm:$0xf]  ;;  %286 = vst [vmem:[#allocation3 + $0x10] sm:$0xf] %v282_v62 }
  0x24   :  { %292 = vst [vmem:[#allocation3 + $0x14] sm:$0xf] %v288_v63  ;;  %v294_v0 = vld [vmem:[#allocation2 + $0x30] sm:$0xf]  ;;  %v300_v1 = vld [vmem:[#allocation2 + $0x38] sm:$0xf] }
  0x25   :  { %298 = vst [vmem:[#allocation3 + $0x18] sm:$0xf] %v294_v0  ;;  %304 = vst [vmem:[#allocation3 + $0x1c] sm:$0xf] %v300_v1 }
  0x28   :  { %v320_v2 = vld [vmem:[#allocation3] sm:$0xff]  }
  0x29   :  { %321 = vst [vmem:[%s488_s1] sm:$0xff] %v320_v2  }
  0x2a   :  { %v324_v3 = vld [vmem:[#allocation3 + $0x8] sm:$0xff]  }
  0x2b   :  { %325 = vst [vmem:[%s488_s1 + $0x8] sm:$0xff] %v324_v3   ;;  %v328_v4 = vld [vmem:[#allocation3 + $0x10] sm:$0xff]  }
  0x2c   :  { %329 = vst [vmem:[%s488_s1 + $0x10] sm:$0xff] %v328_v4   ;;  %v332_v5 = vld [vmem:[#allocation3 + $0x18] sm:$0xff]  }
  0x2d   :  { %333 = vst [vmem:[%s488_s1 + $0x18] sm:$0xff] %v332_v5  }

// kernel: ffc_forward.4
= control target key start
LH: loop header
LB: loop body
LE: loop exit
PB: predicated region body
PF: predicated region fallthrough
CT: control target
= control target key end

     0   :  { %v195_v0 = vmov 0.0   ;;  %vm196_vm0 = vmmov 0   ;;  %v197_v3 = vmov 0   ;;  %vm53_vm1 = vcmask 1043456   ;;  %s249_s0 = inlined_call_operand.vmem [shape: bf16[24,384], index: 0, kind: input, shape index: {}]   ;;  %s250_s1 = inlined_call_operand.vmem [shape: bf16[16,24], index: 1, kind: input, shape index: {}]   ;;  %s251_s2 = inlined_call_operand.vmem [shape: f32[16,384], index: 2, kind: output, shape index: {}]  }
   0x1   :  { %176 = vmatprep.subr.bf16.mxu1 %v195_v0  ;;  %v187_v1 = vld [vmem:[%s249_s0 + $0x4] ss:$12 sps:$4 sm:$0xff]   ;;  %180 = vmatprep.mubr.msk.bf16.mxu1 %vm196_vm0, %v195_v0  ;;  %v189_v2 = vld [vmem:[%s249_s0 + $0x8] ss:$12 sps:$4 sm:$0xff]   ;;  %v190_v4 = vld [vmem:[%s249_s0] ss:$12 sps:$4 sm:$0xff]  }
   0x2   :  { %95 = vmatprep.mubr.bf16.mxu0 %v197_v3  ;;  %63 = vmatprep.subr.bf16.mxu0 %v187_v1  ;;  %v18_v5 = vld [vmem:[%s249_s0 + $0x18] sm:$0xff]  ;;  %v192_v7 = vld [vmem:[%s249_s0 + $0x20] ss:$0 sps:$4 sm:$0xff]   ;;  %vm49_vm2 = vcmask 195584  }
   0x3   :  { %177 = vmatpush3.bf16.msra.mxu1 %v189_v2  ;;  %v168_v6 = vcombine.high %v18_v5, %v18_v5  ;;  %v167_v8 = vcombine.low %v18_v5, %v18_v5  ;;  %64 = vmatpush1.bf16.msra.mxu0 %v190_v4  ;;  %v61_v9 = vsel %vm53_vm1, %v192_v7, 0  ;;  %v194_v11 = vld [vmem:[%s250_s1] sm:$0xff]  }
   0x4   :  { %178 = vmatprep.subr.bf16.mxu1 %v195_v0 }
   0x5   :  { %170 = vmatprep.subr.msk.bf16.mxu0 %vm53_vm1, %v168_v6  ;;  %v55_v10 = vsel %vm53_vm1, %v167_v8, 0 }
   0x7   :  { %179 = vmatpush3.bf16.msra.mxu1 %v61_v9  ;;  %66 = vmatpush1.bf16.msra.mxu0 %v55_v10 }
   0xa   :  { %181 = vmatmul.mubr.msk.bf16.vlgmr.msra.gmra.mrb[0].mxu1 %vm49_vm2, %v194_v11  ;;  %171 = vmatmul.mubr.msk.bf16.vlgmr.msra.gmra.mrb[0].mxu0 %vm49_vm2, %v194_v11 }
  0xdd   :  { %v140_v12 = vpop.f32.mrb[0].mxu1  ;;  %v97_v14 = vpop.f32.mrb[0].mxu0 }
  0xde   :  { %v149_v13 = vmax.f32 %v140_v12, 0.0  ;;  %v182_v15 = vpop.f32.mrb[1].mxu1  ;;  %v147_v16 = vmax.f32 %v97_v14, 0.0  ;;  %v99_v17 = vpop.f32.mrb[1].mxu0 }
  0xdf   :  { %v143_v18 = vpop.f32.mrb[2].mxu1  ;;  %v148_v19 = vmax.f32 %v99_v17, 0.0  ;;  %v101_v21 = vpop.f32.mrb[2].mxu0 }
  0xe0   :  { %155 = vst [vmem:[%s251_s2 + $0x10] sm:$0xff] %v149_v13  ;;  %v152_v20 = vmax.f32 %v143_v18, 0.0  ;;  %v183_v22 = vpop.f32.mrb[3].mxu1  ;;  %153 = vst [vmem:[%s251_s2] sm:$0xff] %v147_v16  ;;  %v150_v23 = vmax.f32 %v101_v21, 0.0  ;;  %v103_v24 = vpop.f32.mrb[3].mxu0 }
  0xe1   :  { %154 = vst [vmem:[%s251_s2 + $0x8] sm:$0xff] %v148_v19  ;;  %v151_v25 = vmax.f32 %v103_v24, 0.0 }
  0xe2   :  { %158 = vst [vmem:[%s251_s2 + $0x28] sm:$0xff] %v152_v20  ;;  %156 = vst [vmem:[%s251_s2 + $0x18] sm:$0xff] %v150_v23 }
  0xe3   :  { %157 = vst [vmem:[%s251_s2 + $0x20] sm:$0xff] %v151_v25 }

// kernel: tile.9
= control target key start
LH: loop header
LB: loop body
LE: loop exit
PB: predicated region body
PF: predicated region fallthrough
CT: control target
= control target key end

     0   :  { %vm643_vm0 = vcmask 1041409   ;;  %vm647_vm1 = vcmask 1042434   ;;  %vm651_vm2 = vcmask 1043459   ;;  %vm655_vm3 = vcmask 1044484   ;;  %s2099_s15 = smov 112   ;;  %s2100_s18 = smov 120   ;;  %s2762_s0 = inlined_call_operand.vmem [shape: f32[4,2,2,8,2,8], index: 0, kind: input, shape index: {}]   ;;  %s2763_s1 = inlined_call_operand.vmem [shape: f32[4,512], index: 1, kind: output, shape index: {}]  }
   0x1   :  { %v1970_v0 = vld [vmem:[%s2762_s0 + $0xde] sm:$0x3]  ;;  %v1978_v1 = vld [vmem:[%s2762_s0 + $0xce] sm:$0x3]  ;;  %v1955_v16 = vld [vmem:[%s2762_s0 + $0xfc] sm:$0x3] }
   0x2   :  { %v2002_v2 = vld [vmem:[%s2762_s0 + $0x9e] sm:$0x3]  ;;  %88 = vst [vmem:[#allocation1 + $0x378] sm:$0x3] %v1970_v0  ;;  %128 = vst [vmem:[#allocation1 + $0x338] sm:$0x3] %v1978_v1 }
   0x3   :  { %248 = vst [vmem:[#allocation1 + $0x278] sm:$0x3] %v2002_v2  ;;  %v2010_v3 = vld [vmem:[%s2762_s0 + $0x8e] sm:$0x3]  ;;  %v2034_v4 = vld [vmem:[%s2762_s0 + $0x5e] sm:$0x3] }
   0x4   :  { %v2042_v5 = vld [vmem:[%s2762_s0 + $0x4e] sm:$0x3]  ;;  %288 = vst [vmem:[#allocation1 + $0x238] sm:$0x3] %v2010_v3  ;;  %408 = vst [vmem:[#allocation1 + $0x178] sm:$0x3] %v2034_v4 }
   0x5   :  { %448 = vst [vmem:[#allocation1 + $0x138] sm:$0x3] %v2042_v5  ;;  %v2066_v6 = vld [vmem:[%s2762_s0 + $0x1e] sm:$0x3]  ;;  %v2074_v7 = vld [vmem:[%s2762_s0 + $0xe] sm:$0x3] }
   0x6   :  { %568 = vst [vmem:[#allocation1 + $0x78] sm:$0x3] %v2066_v6  ;;  %608 = vst [vmem:[#allocation1 + $0x38] sm:$0x3] %v2074_v7  ;;  %v1954_v8 = vld [vmem:[%s2762_s0 + $0xfe] sm:$0x3] }
   0x7   :  { %v1962_v9 = vld [vmem:[%s2762_s0 + $0xee] sm:$0x3]  ;;  %8 = vst [vmem:[#allocation1 + $0x3f8] sm:$0x3] %v1954_v8  ;;  %v1986_v10 = vld [vmem:[%s2762_s0 + $0xbe] sm:$0x3] }
   0x8   :  { %48 = vst [vmem:[#allocation1 + $0x3b8] sm:$0x3] %v1962_v9  ;;  %v1994_v11 = vld [vmem:[%s2762_s0 + $0xae] sm:$0x3]  ;;  %v2018_v12 = vld [vmem:[%s2762_s0 + $0x7e] sm:$0x3] }
   0x9   :  { %168 = vst [vmem:[#allocation1 + $0x2f8] sm:$0x3] %v1986_v10  ;;  %208 = vst [vmem:[#allocation1 + $0x2b8] sm:$0x3] %v1994_v11  ;;  %v2026_v13 = vld [vmem:[%s2762_s0 + $0x6e] sm:$0x3] }
   0xa   :  { %328 = vst [vmem:[#allocation1 + $0x1f8] sm:$0x3] %v2018_v12  ;;  %v2050_v14 = vld [vmem:[%s2762_s0 + $0x3e] sm:$0x3]  ;;  %v2058_v15 = vld [vmem:[%s2762_s0 + $0x2e] sm:$0x3] }
   0xb   :  { %368 = vst [vmem:[#allocation1 + $0x1b8] sm:$0x3] %v2026_v13  ;;  %488 = vst [vmem:[#allocation1 + $0xf8] sm:$0x3] %v2050_v14  ;;  %v1963_v17 = vld [vmem:[%s2762_s0 + $0xec] sm:$0x3] }
   0xc   :  { %528 = vst [vmem:[#allocation1 + $0xb8] sm:$0x3] %v2058_v15  ;;  %v1987_v18 = vld [vmem:[%s2762_s0 + $0xbc] sm:$0x3]  ;;  %vm659_vm4 = vcmask 1045509   ;;  %vm663_vm5 = vcmask 1046534  }
   0xd   :  { %vm667_vm6 = vcmask 1047559   ;;  %13 = vst [vmem:[#allocation1 + $0x3f0] sm:$0x3] %v1955_v16  ;;  %53 = vst [vmem:[#allocation1 + $0x3b0] sm:$0x3] %v1963_v17  ;;  %s2101_s26 = smov 104  }
   0xe   :  { %173 = vst [vmem:[#allocation1 + $0x2f0] sm:$0x3] %v1987_v18  ;;  %v784_v19 = vld [vmem:[#allocation1 + $0x137] sm:$0x2]   ;;  %v709_v24 = vld [vmem:[#allocation1 + $0x39] sm:$0x1]  }
   0xf   :  { %v788_v20 = vld [vmem:[#allocation1 + $0x236] sm:$0x4]   ;;  %v711_v27 = vld [vmem:[#allocation1 + $0x138] sm:$0x2]   ;;  %v1995_v6 = vld [vmem:[%s2762_s0 + $0xac] sm:$0x3] }
  0x10   :  { %v792_v21 = vld [vmem:[#allocation1 + $0x335] sm:$0x8]   ;;  %v715_v28 = vld [vmem:[#allocation1 + $0x237] sm:$0x4]   ;;  %v713_v33 = vsel %vm643_vm0, %v711_v27, %v709_v24  ;;  %213 = vst [vmem:[#allocation1 + $0x2b0] sm:$0x3] %v1995_v6 }
  0x11   :  { %v782_v22 = vld [vmem:[#allocation1 + $0x38] sm:$0x1]   ;;  %v719_v29 = vld [vmem:[#allocation1 + $0x336] sm:$0x8]   ;;  %v717_v37 = vsel %vm647_vm1, %v715_v28, %v713_v33  ;;  %v2019_v9 = vld [vmem:[%s2762_s0 + $0x7c] sm:$0x3] }
  0x12   :  { %v796_v23 = vld [vmem:[#allocation1 + $0x74] sm:$0x10]   ;;  %v786_v25 = vsel %vm643_vm0, %v784_v19, %v782_v22  ;;  %v723_v34 = vld [vmem:[#allocation1 + $0x75] sm:$0x10]   ;;  %v721_v42 = vsel %vm651_vm2, %v719_v29, %v717_v37  ;;  %v2027_v10 = vld [vmem:[%s2762_s0 + $0x6c] sm:$0x3] }
  0x13   :  { %v804_v26 = vld [vmem:[#allocation1 + $0x272] sm:$0x40]   ;;  %v790_v30 = vsel %vm647_vm1, %v788_v20, %v786_v25  ;;  %v727_v35 = vld [vmem:[#allocation1 + $0x174] sm:$0x20]   ;;  %v725_v47 = vsel %vm655_vm3, %v723_v34, %v721_v42  ;;  %v2051_v11 = vld [vmem:[%s2762_s0 + $0x3c] sm:$0x3] }
  0x14   :  { %v800_v31 = vld [vmem:[#allocation1 + $0x173] sm:$0x20]   ;;  %v794_v36 = vsel %vm651_vm2, %v792_v21, %v790_v30  ;;  %v731_v38 = vld [vmem:[#allocation1 + $0x273] sm:$0x40]   ;;  %v729_v53 = vsel %vm659_vm4, %v727_v35, %v725_v47  ;;  %333 = vst [vmem:[#allocation1 + $0x1f0] sm:$0x3] %v2019_v9 }
  0x15   :  { %v808_v32 = vld [vmem:[#allocation1 + $0x371] sm:$0x80]   ;;  %v735_v39 = vld [vmem:[#allocation1 + $0x372] sm:$0x80]   ;;  %v798_v41 = vsel %vm655_vm3, %v796_v23, %v794_v36  ;;  %v733_v59 = vsel %vm663_vm5, %v731_v38, %v729_v53  ;;  %373 = vst [vmem:[#allocation1 + $0x1b0] sm:$0x3] %v2027_v10 }
  0x16   :  { %v824_v40 = vld [vmem:[#allocation1 + $0x2b6] sm:$0x4]   ;;  %v802_v46 = vsel %vm659_vm4, %v800_v31, %v798_v41  ;;  %v745_v55 = vld [vmem:[#allocation1 + $0xb9] sm:$0x1]   ;;  %v737_v1 = vsel %vm667_vm6, %v735_v39, %v733_v59  ;;  %493 = vst [vmem:[#allocation1 + $0xf0] sm:$0x3] %v2051_v11 }
  0x17   :  { %v818_v43 = vld [vmem:[#allocation1 + $0xb8] sm:$0x1]   ;;  %v806_v52 = vsel %vm663_vm5, %v804_v26, %v802_v46  ;;  %v747_v56 = vld [vmem:[#allocation1 + $0x1b8] sm:$0x2]   ;;  %738 = vrot.lane.b32.xlu0 %v737_v1, %s2100_s18  ;;  %v2059_v15 = vld [vmem:[%s2762_s0 + $0x2c] sm:$0x3] }
  0x18   :  { %v820_v44 = vld [vmem:[#allocation1 + $0x1b7] sm:$0x2]   ;;  %v751_v57 = vld [vmem:[#allocation1 + $0x2b7] sm:$0x4]   ;;  %v810_v58 = vsel %vm667_vm6, %v808_v32, %v806_v52  ;;  %v749_v62 = vsel %vm643_vm0, %v747_v56, %v745_v55  ;;  %533 = vst [vmem:[#allocation1 + $0xb0] sm:$0x3] %v2059_v15 }
  0x19   :  { %v828_v45 = vld [vmem:[#allocation1 + $0x3b5] sm:$0x8]   ;;  %v822_v48 = vsel %vm643_vm0, %v820_v44, %v818_v43  ;;  %v755_v63 = vld [vmem:[#allocation1 + $0x3b6] sm:$0x8]   ;;  %811 = vrot.lane.b32.xlu1 %v810_v58, %s2099_s15  ;;  %v753_v3 = vsel %vm647_vm1, %v751_v57, %v749_v62  ;;  %v1971_v18 = vld [vmem:[%s2762_s0 + $0xdc] sm:$0x3] }
  0x1a   :  { %v832_v49 = vld [vmem:[#allocation1 + $0xf4] sm:$0x10]   ;;  %v826_v54 = vsel %vm647_vm1, %v824_v40, %v822_v48  ;;  %v759_v0 = vld [vmem:[#allocation1 + $0xf5] sm:$0x10]   ;;  %v757_v8 = vsel %vm651_vm2, %v755_v63, %v753_v3  ;;  %v1979_v19 = vld [vmem:[%s2762_s0 + $0xcc] sm:$0x3] }
  0x1b   :  { %v836_v50 = vld [vmem:[#allocation1 + $0x1f3] sm:$0x20]   ;;  %v830_v60 = vsel %vm651_vm2, %v828_v45, %v826_v54  ;;  %v763_v4 = vld [vmem:[#allocation1 + $0x1f4] sm:$0x20]   ;;  %v761_v13 = vsel %vm655_vm3, %v759_v0, %v757_v8  ;;  %93 = vst [vmem:[#allocation1 + $0x370] sm:$0x3] %v1971_v18 }
  0x1c   :  { %v840_v51 = vld [vmem:[#allocation1 + $0x2f2] sm:$0x40]   ;;  %v834_v2 = vsel %vm655_vm3, %v832_v49, %v830_v60  ;;  %v767_v5 = vld [vmem:[#allocation1 + $0x2f3] sm:$0x40]   ;;  %v765_v17 = vsel %vm659_vm4, %v763_v4, %v761_v13  ;;  %133 = vst [vmem:[#allocation1 + $0x330] sm:$0x3] %v1979_v19 }
  0x1d   :  { %v844_v61 = vld [vmem:[#allocation1 + $0x3f1] sm:$0x80]   ;;  %v838_v7 = vsel %vm659_vm4, %v836_v50, %v834_v2  ;;  %v771_v14 = vld [vmem:[#allocation1 + $0x3f2] sm:$0x80]   ;;  %v769_v20 = vsel %vm663_vm5, %v767_v5, %v765_v17  ;;  %v2003_v21 = vld [vmem:[%s2762_s0 + $0x9c] sm:$0x3] }
  0x1e   :  { %v842_v12 = vsel %vm663_vm5, %v840_v51, %v838_v7  ;;  %v2011_v22 = vld [vmem:[%s2762_s0 + $0x8c] sm:$0x3]  ;;  %v2035_v23 = vld [vmem:[%s2762_s0 + $0x5c] sm:$0x3]  ;;  %v773_v24 = vsel %vm667_vm6, %v771_v14, %v769_v20  ;;  %253 = vst [vmem:[#allocation1 + $0x270] sm:$0x3] %v2003_v21 }
  0x1f   :  { %v846_v16 = vsel %vm667_vm6, %v844_v61, %v842_v12  ;;  %293 = vst [vmem:[#allocation1 + $0x230] sm:$0x3] %v2011_v22  ;;  %413 = vst [vmem:[#allocation1 + $0x170] sm:$0x3] %v2035_v23  ;;  %v2043_v25 = vld [vmem:[%s2762_s0 + $0x4c] sm:$0x3]  ;;  %774 = vrot.lane.b32.xlu0 %v773_v24, %s2100_s18 }
  0x20   :  { %847 = vrot.lane.b32.xlu1 %v846_v16, %s2099_s15  ;;  %v2067_v26 = vld [vmem:[%s2762_s0 + $0x1c] sm:$0x3]  ;;  %v2075_v27 = vld [vmem:[%s2762_s0 + $0xc] sm:$0x3]  ;;  %453 = vst [vmem:[#allocation1 + $0x130] sm:$0x3] %v2043_v25 }
  0x21   :  { %573 = vst [vmem:[#allocation1 + $0x70] sm:$0x3] %v2067_v26  ;;  %613 = vst [vmem:[#allocation1 + $0x30] sm:$0x3] %v2075_v27  ;;  %v1956_v28 = vld [vmem:[%s2762_s0 + $0xfa] sm:$0x3] }
  0x22   :  { %v1964_v29 = vld [vmem:[%s2762_s0 + $0xea] sm:$0x3]  ;;  %v901_v30 = vld [vmem:[#allocation1 + $0x3ae] sm:$0x8]   ;;  %v974_v31 = vld [vmem:[#allocation1 + $0x3ad] sm:$0x8]  }
  0x23   :  { %18 = vst [vmem:[#allocation1 + $0x3e8] sm:$0x3] %v1956_v28  ;;  %58 = vst [vmem:[#allocation1 + $0x3a8] sm:$0x3] %v1964_v29  ;;  %v1988_v32 = vld [vmem:[%s2762_s0 + $0xba] sm:$0x3] }
  0x24   :  { %v893_v33 = vld [vmem:[#allocation1 + $0x1b0] sm:$0x2]   ;;  %v970_v35 = vld [vmem:[#allocation1 + $0x2ae] sm:$0x4]   ;;  %178 = vst [vmem:[#allocation1 + $0x2e8] sm:$0x3] %v1988_v32 }
  0x25   :  { %v897_v34 = vld [vmem:[#allocation1 + $0x2af] sm:$0x4]   ;;  %v964_v37 = vld [vmem:[#allocation1 + $0xb0] sm:$0x1]   ;;  %v1996_v18 = vld [vmem:[%s2762_s0 + $0xaa] sm:$0x3] }
  0x26   :  { %v891_v36 = vld [vmem:[#allocation1 + $0xb1] sm:$0x1]   ;;  %v966_v38 = vld [vmem:[#allocation1 + $0x1af] sm:$0x2]   ;;  %v2020_v19 = vld [vmem:[%s2762_s0 + $0x7a] sm:$0x3] }
  0x27   :  { %v895_v39 = vsel %vm643_vm0, %v893_v33, %v891_v36  ;;  %v905_v40 = vld [vmem:[#allocation1 + $0xed] sm:$0x10]   ;;  %v968_v42 = vsel %vm643_vm0, %v966_v38, %v964_v37  ;;  %v978_v43 = vld [vmem:[#allocation1 + $0xec] sm:$0x10]   ;;  %v2028_v20 = vld [vmem:[%s2762_s0 + $0x6a] sm:$0x3] }
  0x28   :  { %v913_v41 = vld [vmem:[#allocation1 + $0x2eb] sm:$0x40]   ;;  %v986_v44 = vld [vmem:[#allocation1 + $0x2ea] sm:$0x40]   ;;  %v899_v45 = vsel %vm647_vm1, %v897_v34, %v895_v39  ;;  %v972_v50 = vsel %vm647_vm1, %v970_v35, %v968_v42  ;;  %218 = vst [vmem:[#allocation1 + $0x2a8] sm:$0x3] %v1996_v18 }
  0x29   :  { %v909_v46 = vld [vmem:[#allocation1 + $0x1ec] sm:$0x20]   ;;  %v903_v51 = vsel %vm651_vm2, %v901_v30, %v899_v45  ;;  %v976_v56 = vsel %vm651_vm2, %v974_v31, %v972_v50  ;;  %v982_v60 = vld [vmem:[#allocation1 + $0x1eb] sm:$0x20]   ;;  %338 = vst [vmem:[#allocation1 + $0x1e8] sm:$0x3] %v2020_v19 }
  0x2a   :  { %v917_v47 = vld [vmem:[#allocation1 + $0x3ea] sm:$0x80]   ;;  %v907_v57 = vsel %vm655_vm3, %v905_v40, %v903_v51  ;;  %v980_v59 = vsel %vm655_vm3, %v978_v43, %v976_v56  ;;  %v990_v61 = vld [vmem:[#allocation1 + $0x3e9] sm:$0x80]   ;;  %378 = vst [vmem:[#allocation1 + $0x1a8] sm:$0x3] %v2028_v20 }
  0x2b   :  { %v861_v48 = vld [vmem:[#allocation1 + $0x22f] sm:$0x4]   ;;  %v928_v62 = vld [vmem:[#allocation1 + $0x30] sm:$0x1]   ;;  %v911_v0 = vsel %vm659_vm4, %v909_v46, %v907_v57  ;;  %v984_v3 = vsel %vm659_vm4, %v982_v60, %v980_v59  ;;  %v2052_v23 = vld [vmem:[%s2762_s0 + $0x3a] sm:$0x3] }
  0x2c   :  { %v865_v49 = vld [vmem:[#allocation1 + $0x32e] sm:$0x8]   ;;  %v930_v63 = vld [vmem:[#allocation1 + $0x12f] sm:$0x2]   ;;  %v915_v8 = vsel %vm663_vm5, %v913_v41, %v911_v0  ;;  %v988_v11 = vsel %vm663_vm5, %v986_v44, %v984_v3  ;;  %v2060_v24 = vld [vmem:[%s2762_s0 + $0x2a] sm:$0x3] }
  0x2d   :  { %v855_v52 = vld [vmem:[#allocation1 + $0x31] sm:$0x1]   ;;  %v932_v4 = vsel %vm643_vm0, %v930_v63, %v928_v62  ;;  %v934_v5 = vld [vmem:[#allocation1 + $0x22e] sm:$0x4]   ;;  %v919_v15 = vsel %vm667_vm6, %v917_v47, %v915_v8  ;;  %v992_v26 = vsel %vm667_vm6, %v990_v61, %v988_v11  ;;  %498 = vst [vmem:[#allocation1 + $0xe8] sm:$0x3] %v2052_v23 }
  0x2e   :  { %v857_v53 = vld [vmem:[#allocation1 + $0x130] sm:$0x2]   ;;  %v938_v6 = vld [vmem:[#allocation1 + $0x32d] sm:$0x8]   ;;  %v936_v12 = vsel %vm647_vm1, %v934_v5, %v932_v4  ;;  %920 = vrot.lane.b32.xlu1 %v919_v15, %s2101_s26  ;;  %538 = vst [vmem:[#allocation1 + $0xa8] sm:$0x3] %v2060_v24 }
  0x2f   :  { %v869_v54 = vld [vmem:[#allocation1 + $0x6d] sm:$0x10]   ;;  %v859_v58 = vsel %vm643_vm0, %v857_v53, %v855_v52  ;;  %v942_v7 = vld [vmem:[#allocation1 + $0x6c] sm:$0x10]   ;;  %v940_v17 = vsel %vm651_vm2, %v938_v6, %v936_v12  ;;  %v1972_v29 = vld [vmem:[%s2762_s0 + $0xda] sm:$0x3] }
  0x30   :  { %v873_v55 = vld [vmem:[#allocation1 + $0x16c] sm:$0x20]   ;;  %v863_v1 = vsel %vm647_vm1, %v861_v48, %v859_v58  ;;  %v946_v13 = vld [vmem:[#allocation1 + $0x16b] sm:$0x20]   ;;  %v944_v22 = vsel %vm655_vm3, %v942_v7, %v940_v17  ;;  %98 = vst [vmem:[#allocation1 + $0x368] sm:$0x3] %v1972_v29 }
  0x31   :  { %v881_v2 = vld [vmem:[#allocation1 + $0x36a] sm:$0x80]   ;;  %v867_v9 = vsel %vm651_vm2, %v865_v49, %v863_v1  ;;  %v950_v14 = vld [vmem:[#allocation1 + $0x26a] sm:$0x40]   ;;  %v948_v27 = vsel %vm659_vm4, %v946_v13, %v944_v22  ;;  %v1980_v32 = vld [vmem:[%s2762_s0 + $0xca] sm:$0x3] }
  0x32   :  { %v877_v10 = vld [vmem:[#allocation1 + $0x26b] sm:$0x40]   ;;  %v871_v16 = vsel %vm655_vm3, %v869_v54, %v867_v9  ;;  %v954_v28 = vld [vmem:[#allocation1 + $0x369] sm:$0x80]   ;;  %v952_v31 = vsel %vm663_vm5, %v950_v14, %v948_v27  ;;  %v2004_v33 = vld [vmem:[%s2762_s0 + $0x9a] sm:$0x3] }
  0x33   :  { %v875_v21 = vsel %vm659_vm4, %v873_v55, %v871_v16  ;;  %v2012_v34 = vld [vmem:[%s2762_s0 + $0x8a] sm:$0x3]  ;;  %138 = vst [vmem:[#allocation1 + $0x328] sm:$0x3] %v1980_v32  ;;  %258 = vst [vmem:[#allocation1 + $0x268] sm:$0x3] %v2004_v33  ;;  %v956_v38 = vsel %vm667_vm6, %v954_v28, %v952_v31 }
  0x34   :  { %v879_v25 = vsel %vm663_vm5, %v877_v10, %v875_v21  ;;  %298 = vst [vmem:[#allocation1 + $0x228] sm:$0x3] %v2012_v34  ;;  %v2036_v35 = vld [vmem:[%s2762_s0 + $0x5a] sm:$0x3]  ;;  %v2044_v36 = vld [vmem:[%s2762_s0 + $0x4a] sm:$0x3] }
  0x35   :  { %v883_v30 = vsel %vm667_vm6, %v881_v2, %v879_v25  ;;  %v2068_v37 = vld [vmem:[%s2762_s0 + $0x1a] sm:$0x3]  ;;  %s2102_s16 = smov 96   ;;  %418 = vst [vmem:[#allocation1 + $0x168] sm:$0x3] %v2036_v35  ;;  %s2103_s29 = smov 88  }
  0x36   :  { %884 = vrot.lane.b32.xlu0 %v883_v30, %s2101_s26  ;;  %993 = vrot.lane.b32.xlu1 %v992_v26, %s2102_s16  ;;  %458 = vst [vmem:[#allocation1 + $0x128] sm:$0x3] %v2044_v36  ;;  %578 = vst [vmem:[#allocation1 + $0x68] sm:$0x3] %v2068_v37  ;;  %v2076_v39 = vld [vmem:[%s2762_s0 + $0xa] sm:$0x3] }
  0x37   :  { %618 = vst [vmem:[#allocation1 + $0x28] sm:$0x3] %v2076_v39  ;;  %v1957_v40 = vld [vmem:[%s2762_s0 + $0xf8] sm:$0x3]  ;;  %v1965_v41 = vld [vmem:[%s2762_s0 + $0xe8] sm:$0x3] }
  0x38   :  { %23 = vst [vmem:[#allocation1 + $0x3e0] sm:$0x3] %v1957_v40  ;;  %v1989_v42 = vld [vmem:[%s2762_s0 + $0xb8] sm:$0x3]  ;;  %v1997_v43 = vld [vmem:[%s2762_s0 + $0xa8] sm:$0x3] }
  0x39   :  { %v1039_v44 = vld [vmem:[#allocation1 + $0x1a8] sm:$0x2]   ;;  %63 = vst [vmem:[#allocation1 + $0x3a0] sm:$0x3] %v1965_v41  ;;  %183 = vst [vmem:[#allocation1 + $0x2e0] sm:$0x3] %v1989_v42 }
  0x3a   :  { %957 = vrot.lane.b32.xlu0 %v956_v38, %s2102_s16  ;;  %v1043_v45 = vld [vmem:[#allocation1 + $0x2a7] sm:$0x4]   ;;  %223 = vst [vmem:[#allocation1 + $0x2a0] sm:$0x3] %v1997_v43  ;;  %v1110_v48 = vld [vmem:[#allocation1 + $0xa8] sm:$0x1]  }
  0x3b   :  { %v1047_v46 = vld [vmem:[#allocation1 + $0x3a6] sm:$0x8]   ;;  %v1120_v49 = vld [vmem:[#allocation1 + $0x3a5] sm:$0x8]   ;;  %v2021_v29 = vld [vmem:[%s2762_s0 + $0x78] sm:$0x3] }
  0x3c   :  { %v1037_v47 = vld [vmem:[#allocation1 + $0xa9] sm:$0x1]   ;;  %v1112_v53 = vld [vmem:[#allocation1 + $0x1a7] sm:$0x2]   ;;  %343 = vst [vmem:[#allocation1 + $0x1e0] sm:$0x3] %v2021_v29 }
  0x3d   :  { %v1041_v50 = vsel %vm643_vm0, %v1039_v44, %v1037_v47  ;;  %v1051_v51 = vld [vmem:[#allocation1 + $0xe5] sm:$0x10]   ;;  %v1116_v54 = vld [vmem:[#allocation1 + $0x2a6] sm:$0x4]   ;;  %v1114_v59 = vsel %vm643_vm0, %v1112_v53, %v1110_v48  ;;  %v2053_v33 = vld [vmem:[%s2762_s0 + $0x38] sm:$0x3] }
  0x3e   :  { %v1059_v52 = vld [vmem:[#allocation1 + $0x2e3] sm:$0x40]   ;;  %v1045_v55 = vsel %vm647_vm1, %v1043_v45, %v1041_v50  ;;  %v1132_v60 = vld [vmem:[#allocation1 + $0x2e2] sm:$0x40]   ;;  %v1118_v1 = vsel %vm647_vm1, %v1116_v54, %v1114_v59  ;;  %503 = vst [vmem:[#allocation1 + $0xe0] sm:$0x3] %v2053_v33 }
  0x3f   :  { %v1055_v56 = vld [vmem:[#allocation1 + $0x1e4] sm:$0x20]   ;;  %v1049_v61 = vsel %vm651_vm2, %v1047_v46, %v1045_v55  ;;  %v1122_v4 = vsel %vm651_vm2, %v1120_v49, %v1118_v1  ;;  %v1124_v5 = vld [vmem:[#allocation1 + $0xe4] sm:$0x10]   ;;  %v1973_v41 = vld [vmem:[%s2762_s0 + $0xd8] sm:$0x3] }
  0x40   :  { %v1063_v57 = vld [vmem:[#allocation1 + $0x3e2] sm:$0x80]   ;;  %v1053_v2 = vsel %vm655_vm3, %v1051_v51, %v1049_v61  ;;  %v1128_v6 = vld [vmem:[#allocation1 + $0x1e3] sm:$0x20]   ;;  %v1126_v11 = vsel %vm655_vm3, %v1124_v5, %v1122_v4  ;;  %103 = vst [vmem:[#allocation1 + $0x360] sm:$0x3] %v1973_v41 }
  0x41   :  { %v1007_v58 = vld [vmem:[#allocation1 + $0x227] sm:$0x4]   ;;  %v1136_v7 = vld [vmem:[#allocation1 + $0x3e1] sm:$0x80]   ;;  %v1057_v8 = vsel %vm659_vm4, %v1055_v56, %v1053_v2  ;;  %v1130_v19 = vsel %vm659_vm4, %v1128_v6, %v1126_v11  ;;  %v2005_v45 = vld [vmem:[%s2762_s0 + $0x98] sm:$0x3] }
  0x42   :  { %v1003_v62 = vld [vmem:[#allocation1 + $0x128] sm:$0x2]   ;;  %v1074_v12 = vld [vmem:[#allocation1 + $0x28] sm:$0x1]   ;;  %v1061_v15 = vsel %vm663_vm5, %v1059_v52, %v1057_v8  ;;  %v1134_v25 = vsel %vm663_vm5, %v1132_v60, %v1130_v19  ;;  %v2037_v47 = vld [vmem:[%s2762_s0 + $0x58] sm:$0x3] }
  0x43   :  { %v1011_v63 = vld [vmem:[#allocation1 + $0x326] sm:$0x8]   ;;  %v1076_v13 = vld [vmem:[#allocation1 + $0x127] sm:$0x2]   ;;  %v1065_v23 = vsel %vm667_vm6, %v1063_v57, %v1061_v15  ;;  %v1138_v36 = vsel %vm667_vm6, %v1136_v7, %v1134_v25  ;;  %s2104_s17 = smov 80   ;;  %s2105_s3 = smov 72  }
  0x44   :  { %v1015_v0 = vld [vmem:[#allocation1 + $0x65] sm:$0x10]   ;;  %v1080_v14 = vld [vmem:[#allocation1 + $0x226] sm:$0x4]   ;;  %v1078_v20 = vsel %vm643_vm0, %v1076_v13, %v1074_v12  ;;  %1066 = vrot.lane.b32.xlu1 %v1065_v23, %s2103_s29  ;;  %263 = vst [vmem:[#allocation1 + $0x260] sm:$0x3] %v2005_v45 }
  0x45   :  { %v1001_v3 = vld [vmem:[#allocation1 + $0x29] sm:$0x1]   ;;  %v1084_v21 = vld [vmem:[#allocation1 + $0x325] sm:$0x8]   ;;  %v1082_v26 = vsel %vm647_vm1, %v1080_v14, %v1078_v20  ;;  %423 = vst [vmem:[#allocation1 + $0x160] sm:$0x3] %v2037_v47 }
  0x46   :  { %v1005_v9 = vsel %vm643_vm0, %v1003_v62, %v1001_v3  ;;  %v1023_v10 = vld [vmem:[#allocation1 + $0x263] sm:$0x40]   ;;  %v1088_v22 = vld [vmem:[#allocation1 + $0x64] sm:$0x10]   ;;  %v1086_v31 = vsel %vm651_vm2, %v1084_v21, %v1082_v26  ;;  %v2069_v49 = vld [vmem:[%s2762_s0 + $0x18] sm:$0x3] }
  0x47   :  { %v1009_v16 = vsel %vm647_vm1, %v1007_v58, %v1005_v9  ;;  %v1019_v17 = vld [vmem:[#allocation1 + $0x164] sm:$0x20]   ;;  %v1092_v27 = vld [vmem:[#allocation1 + $0x163] sm:$0x20]   ;;  %v1090_v37 = vsel %vm655_vm3, %v1088_v22, %v1086_v31  ;;  %583 = vst [vmem:[#allocation1 + $0x60] sm:$0x3] %v2069_v49 }
  0x48   :  { %v1027_v18 = vld [vmem:[#allocation1 + $0x362] sm:$0x80]   ;;  %v1013_v24 = vsel %vm651_vm2, %v1011_v63, %v1009_v16  ;;  %v1096_v28 = vld [vmem:[#allocation1 + $0x262] sm:$0x40]   ;;  %v1094_v39 = vsel %vm659_vm4, %v1092_v27, %v1090_v37  ;;  %1139 = vrot.lane.b32.xlu1 %v1138_v36, %s2104_s17  ;;  %v1189_v52 = vld [vmem:[#allocation1 + $0x29f] sm:$0x4]  }
  0x49   :  { %v1017_v30 = vsel %vm655_vm3, %v1015_v0, %v1013_v24  ;;  %v2029_v32 = vld [vmem:[%s2762_s0 + $0x68] sm:$0x3]  ;;  %v1098_v44 = vsel %vm663_vm5, %v1096_v28, %v1094_v39  ;;  %v1193_v53 = vld [vmem:[#allocation1 + $0x39e] sm:$0x8]   ;;  %v1958_v54 = vld [vmem:[%s2762_s0 + $0xf6] sm:$0x3] }
  0x4a   :  { %v2061_v34 = vld [vmem:[%s2762_s0 + $0x28] sm:$0x3]  ;;  %v1021_v35 = vsel %vm659_vm4, %v1019_v17, %v1017_v30  ;;  %383 = vst [vmem:[#allocation1 + $0x1a0] sm:$0x3] %v2029_v32  ;;  %v1262_v55 = vld [vmem:[#allocation1 + $0x29e] sm:$0x4]  }
  0x4b   :  { %543 = vst [vmem:[#allocation1 + $0xa0] sm:$0x3] %v2061_v34  ;;  %v1025_v38 = vsel %vm663_vm5, %v1023_v10, %v1021_v35  ;;  %v1100_v40 = vld [vmem:[#allocation1 + $0x361] sm:$0x80]   ;;  %28 = vst [vmem:[#allocation1 + $0x3d8] sm:$0x3] %v1958_v54 }
  0x4c   :  { %v1981_v42 = vld [vmem:[%s2762_s0 + $0xc8] sm:$0x3]  ;;  %v1029_v43 = vsel %vm667_vm6, %v1027_v18, %v1025_v38  ;;  %v1102_v50 = vsel %vm667_vm6, %v1100_v40, %v1098_v44  ;;  %v1966_v56 = vld [vmem:[%s2762_s0 + $0xe6] sm:$0x3]  ;;  %v1266_v59 = vld [vmem:[#allocation1 + $0x39d] sm:$0x8]  }
  0x4d   :  { %143 = vst [vmem:[#allocation1 + $0x320] sm:$0x3] %v1981_v42  ;;  %v2013_v46 = vld [vmem:[%s2762_s0 + $0x88] sm:$0x3]  ;;  %1030 = vrot.lane.b32.xlu0 %v1029_v43, %s2103_s29  ;;  %68 = vst [vmem:[#allocation1 + $0x398] sm:$0x3] %v1966_v56 }
  0x4e   :  { %303 = vst [vmem:[#allocation1 + $0x220] sm:$0x3] %v2013_v46  ;;  %v2045_v48 = vld [vmem:[%s2762_s0 + $0x48] sm:$0x3]  ;;  %v1197_v61 = vld [vmem:[#allocation1 + $0xdd] sm:$0x10]  }
  0x4f   :  { %463 = vst [vmem:[#allocation1 + $0x120] sm:$0x3] %v2045_v48  ;;  %v2077_v51 = vld [vmem:[%s2762_s0 + $0x8] sm:$0x3]  ;;  %v1205_v62 = vld [vmem:[#allocation1 + $0x2db] sm:$0x40]  }
  0x50   :  { %623 = vst [vmem:[#allocation1 + $0x20] sm:$0x3] %v2077_v51  ;;  %v1201_v2 = vld [vmem:[#allocation1 + $0x1dc] sm:$0x20]   ;;  %v1270_v5 = vld [vmem:[#allocation1 + $0xdc] sm:$0x10]  }
  0x51   :  { %1103 = vrot.lane.b32.xlu0 %v1102_v50, %s2104_s17  ;;  %v1185_v58 = vld [vmem:[#allocation1 + $0x1a0] sm:$0x2]   ;;  %v1258_v0 = vld [vmem:[#allocation1 + $0x19f] sm:$0x2]   ;;  %v1990_v37 = vld [vmem:[%s2762_s0 + $0xb6] sm:$0x3] }
  0x52   :  { %v1183_v57 = vld [vmem:[#allocation1 + $0xa1] sm:$0x1]   ;;  %v1256_v63 = vld [vmem:[#allocation1 + $0xa0] sm:$0x1]   ;;  %v1998_v38 = vld [vmem:[%s2762_s0 + $0xa6] sm:$0x3] }
  0x53   :  { %v1187_v60 = vsel %vm643_vm0, %v1185_v58, %v1183_v57  ;;  %v1209_v3 = vld [vmem:[#allocation1 + $0x3da] sm:$0x80]   ;;  %v1260_v4 = vsel %vm643_vm0, %v1258_v0, %v1256_v63  ;;  %v1278_v6 = vld [vmem:[#allocation1 + $0x2da] sm:$0x40]   ;;  %188 = vst [vmem:[#allocation1 + $0x2d8] sm:$0x3] %v1990_v37 }
  0x54   :  { %v1191_v1 = vsel %vm647_vm1, %v1189_v52, %v1187_v60  ;;  %v1157_v8 = vld [vmem:[#allocation1 + $0x31e] sm:$0x8]   ;;  %v1264_v9 = vsel %vm647_vm1, %v1262_v55, %v1260_v4  ;;  %v1274_v10 = vld [vmem:[#allocation1 + $0x1db] sm:$0x20]   ;;  %228 = vst [vmem:[#allocation1 + $0x298] sm:$0x3] %v1998_v38 }
  0x55   :  { %v1195_v7 = vsel %vm651_vm2, %v1193_v53, %v1191_v1  ;;  %v1230_v11 = vld [vmem:[#allocation1 + $0x31d] sm:$0x8]   ;;  %v1153_v14 = vld [vmem:[#allocation1 + $0x21f] sm:$0x4]   ;;  %v1268_v15 = vsel %vm651_vm2, %v1266_v59, %v1264_v9  ;;  %v2022_v41 = vld [vmem:[%s2762_s0 + $0x76] sm:$0x3] }
  0x56   :  { %v1199_v12 = vsel %vm655_vm3, %v1197_v61, %v1195_v7  ;;  %v1149_v13 = vld [vmem:[#allocation1 + $0x120] sm:$0x2]   ;;  %v1282_v16 = vld [vmem:[#allocation1 + $0x3d9] sm:$0x80]   ;;  %v1272_v21 = vsel %vm655_vm3, %v1270_v5, %v1268_v15  ;;  %v2030_v42 = vld [vmem:[%s2762_s0 + $0x66] sm:$0x3] }
  0x57   :  { %v1222_v17 = vld [vmem:[#allocation1 + $0x11f] sm:$0x2]   ;;  %v1203_v18 = vsel %vm659_vm4, %v1201_v2, %v1199_v12  ;;  %v1147_v19 = vld [vmem:[#allocation1 + $0x21] sm:$0x1]   ;;  %v1276_v28 = vsel %vm659_vm4, %v1274_v10, %v1272_v21  ;;  %v2054_v43 = vld [vmem:[%s2762_s0 + $0x36] sm:$0x3] }
  0x58   :  { %v1165_v20 = vld [vmem:[#allocation1 + $0x15c] sm:$0x20]   ;;  %v1220_v22 = vld [vmem:[#allocation1 + $0x20] sm:$0x1]   ;;  %v1207_v24 = vsel %vm663_vm5, %v1205_v62, %v1203_v18  ;;  %v1151_v25 = vsel %vm643_vm0, %v1149_v13, %v1147_v19  ;;  %v1280_v34 = vsel %vm663_vm5, %v1278_v6, %v1276_v28  ;;  %348 = vst [vmem:[#allocation1 + $0x1d8] sm:$0x3] %v2022_v41 }
  0x59   :  { %v1226_v23 = vld [vmem:[#allocation1 + $0x21e] sm:$0x4]   ;;  %v1161_v26 = vld [vmem:[#allocation1 + $0x5d] sm:$0x10]   ;;  %v1224_v29 = vsel %vm643_vm0, %v1222_v17, %v1220_v22  ;;  %v1211_v32 = vsel %vm667_vm6, %v1209_v3, %v1207_v24  ;;  %v1155_v33 = vsel %vm647_vm1, %v1153_v14, %v1151_v25  ;;  %v1284_v46 = vsel %vm667_vm6, %v1282_v16, %v1280_v34  ;;  %388 = vst [vmem:[#allocation1 + $0x198] sm:$0x3] %v2030_v42 }
  0x5a   :  { %v1169_v27 = vld [vmem:[#allocation1 + $0x25b] sm:$0x40]   ;;  %v1234_v30 = vld [vmem:[#allocation1 + $0x5c] sm:$0x10]   ;;  %v1228_v35 = vsel %vm647_vm1, %v1226_v23, %v1224_v29  ;;  %1212 = vrot.lane.b32.xlu1 %v1211_v32, %s2105_s3  ;;  %v1159_v39 = vsel %vm651_vm2, %v1157_v8, %v1155_v33  ;;  %508 = vst [vmem:[#allocation1 + $0xd8] sm:$0x3] %v2054_v43 }
  0x5b   :  { %v1238_v31 = vld [vmem:[#allocation1 + $0x15b] sm:$0x20]   ;;  %v1232_v40 = vsel %vm651_vm2, %v1230_v11, %v1228_v35  ;;  %v1163_v44 = vsel %vm655_vm3, %v1161_v26, %v1159_v39  ;;  %v1173_v45 = vld [vmem:[#allocation1 + $0x35a] sm:$0x80]   ;;  %v2062_v49 = vld [vmem:[%s2762_s0 + $0x26] sm:$0x3] }
  0x5c   :  { %v1242_v36 = vld [vmem:[#allocation1 + $0x25a] sm:$0x40]   ;;  %v1236_v47 = vsel %vm655_vm3, %v1234_v30, %v1232_v40  ;;  %v1167_v50 = vsel %vm659_vm4, %v1165_v20, %v1163_v44  ;;  %548 = vst [vmem:[#allocation1 + $0x98] sm:$0x3] %v2062_v49  ;;  %v1974_v52 = vld [vmem:[%s2762_s0 + $0xd6] sm:$0x3] }
  0x5d   :  { %v1246_v48 = vld [vmem:[#allocation1 + $0x359] sm:$0x80]   ;;  %v1240_v51 = vsel %vm659_vm4, %v1238_v31, %v1236_v47  ;;  %v1982_v53 = vld [vmem:[%s2762_s0 + $0xc6] sm:$0x3]  ;;  %v2006_v54 = vld [vmem:[%s2762_s0 + $0x96] sm:$0x3]  ;;  %v1171_v55 = vsel %vm663_vm5, %v1169_v27, %v1167_v50 }
  0x5e   :  { %v1244_v56 = vsel %vm663_vm5, %v1242_v36, %v1240_v51  ;;  %108 = vst [vmem:[#allocation1 + $0x358] sm:$0x3] %v1974_v52  ;;  %148 = vst [vmem:[#allocation1 + $0x318] sm:$0x3] %v1982_v53  ;;  %v2014_v57 = vld [vmem:[%s2762_s0 + $0x86] sm:$0x3]  ;;  %v1175_v60 = vsel %vm667_vm6, %v1173_v45, %v1171_v55 }
  0x5f   :  { %268 = vst [vmem:[#allocation1 + $0x258] sm:$0x3] %v2006_v54  ;;  %v2038_v58 = vld [vmem:[%s2762_s0 + $0x56] sm:$0x3]  ;;  %v2046_v59 = vld [vmem:[%s2762_s0 + $0x46] sm:$0x3]  ;;  %1176 = vrot.lane.b32.xlu0 %v1175_v60, %s2105_s3  ;;  %v1248_v0 = vsel %vm667_vm6, %v1246_v48, %v1244_v56 }
  0x60   :  { %s2106_s24 = smov 64   ;;  %308 = vst [vmem:[#allocation1 + $0x218] sm:$0x3] %v2014_v57  ;;  %428 = vst [vmem:[#allocation1 + $0x158] sm:$0x3] %v2038_v58  ;;  %s2107_s12 = smov 56  }
  0x61   :  { %1285 = vrot.lane.b32.xlu1 %v1284_v46, %s2106_s24  ;;  %468 = vst [vmem:[#allocation1 + $0x118] sm:$0x3] %v2046_v59  ;;  %v2070_v61 = vld [vmem:[%s2762_s0 + $0x16] sm:$0x3]  ;;  %v2078_v62 = vld [vmem:[%s2762_s0 + $0x6] sm:$0x3] }
  0x62   :  { %588 = vst [vmem:[#allocation1 + $0x58] sm:$0x3] %v2070_v61  ;;  %628 = vst [vmem:[#allocation1 + $0x18] sm:$0x3] %v2078_v62  ;;  %v1959_v63 = vld [vmem:[%s2762_s0 + $0xf4] sm:$0x3] }
  0x63   :  { %33 = vst [vmem:[#allocation1 + $0x3d0] sm:$0x3] %v1959_v63  ;;  %v1967_v1 = vld [vmem:[%s2762_s0 + $0xe4] sm:$0x3]  ;;  %v1991_v2 = vld [vmem:[%s2762_s0 + $0xb4] sm:$0x3]  ;;  %1249 = vrot.lane.b32.xlu0 %v1248_v0, %s2106_s24 }
  0x64   :  { %v1999_v3 = vld [vmem:[%s2762_s0 + $0xa4] sm:$0x3]  ;;  %v1339_v4 = vld [vmem:[#allocation1 + $0x396] sm:$0x8]   ;;  %v1412_v5 = vld [vmem:[#allocation1 + $0x395] sm:$0x8]  }
  0x65   :  { %73 = vst [vmem:[#allocation1 + $0x390] sm:$0x3] %v1967_v1  ;;  %193 = vst [vmem:[#allocation1 + $0x2d0] sm:$0x3] %v1991_v2  ;;  %v1331_v6 = vld [vmem:[#allocation1 + $0x198] sm:$0x2]  }
  0x66   :  { %233 = vst [vmem:[#allocation1 + $0x290] sm:$0x3] %v1999_v3  ;;  %v1335_v7 = vld [vmem:[#allocation1 + $0x297] sm:$0x4]   ;;  %v1408_v8 = vld [vmem:[#allocation1 + $0x296] sm:$0x4]  }
  0x67   :  { %v1329_v9 = vld [vmem:[#allocation1 + $0x99] sm:$0x1]   ;;  %v1402_v10 = vld [vmem:[#allocation1 + $0x98] sm:$0x1]   ;;  %v2023_v53 = vld [vmem:[%s2762_s0 + $0x74] sm:$0x3] }
  0x68   :  { %v1404_v11 = vld [vmem:[#allocation1 + $0x197] sm:$0x2]   ;;  %v1333_v12 = vsel %vm643_vm0, %v1331_v6, %v1329_v9  ;;  %v1343_v13 = vld [vmem:[#allocation1 + $0xd5] sm:$0x10]   ;;  %v2031_v54 = vld [vmem:[%s2762_s0 + $0x64] sm:$0x3] }
  0x69   :  { %v1347_v14 = vld [vmem:[#allocation1 + $0x1d4] sm:$0x20]   ;;  %v1406_v16 = vsel %vm643_vm0, %v1404_v11, %v1402_v10  ;;  %v1337_v17 = vsel %vm647_vm1, %v1335_v7, %v1333_v12  ;;  %v1416_v28 = vld [vmem:[#allocation1 + $0xd4] sm:$0x10]   ;;  %353 = vst [vmem:[#allocation1 + $0x1d0] sm:$0x3] %v2023_v53 }
  0x6a   :  { %v1351_v15 = vld [vmem:[#allocation1 + $0x2d3] sm:$0x40]   ;;  %v1410_v22 = vsel %vm647_vm1, %v1408_v8, %v1406_v16  ;;  %v1341_v23 = vsel %vm651_vm2, %v1339_v4, %v1337_v17  ;;  %v1420_v32 = vld [vmem:[#allocation1 + $0x1d3] sm:$0x20]   ;;  %393 = vst [vmem:[#allocation1 + $0x190] sm:$0x3] %v2031_v54 }
  0x6b   :  { %v1355_v18 = vld [vmem:[#allocation1 + $0x3d2] sm:$0x80]   ;;  %v1414_v27 = vsel %vm651_vm2, %v1412_v5, %v1410_v22  ;;  %v1345_v29 = vsel %vm655_vm3, %v1343_v13, %v1341_v23  ;;  %v1424_v33 = vld [vmem:[#allocation1 + $0x2d2] sm:$0x40]   ;;  %v2055_v58 = vld [vmem:[%s2762_s0 + $0x34] sm:$0x3] }
  0x6c   :  { %v1295_v19 = vld [vmem:[#allocation1 + $0x118] sm:$0x2]   ;;  %v1418_v31 = vsel %vm655_vm3, %v1416_v28, %v1414_v27  ;;  %v1428_v34 = vld [vmem:[#allocation1 + $0x3d1] sm:$0x80]   ;;  %v1349_v36 = vsel %vm659_vm4, %v1347_v14, %v1345_v29  ;;  %v2063_v59 = vld [vmem:[%s2762_s0 + $0x24] sm:$0x3] }
  0x6d   :  { %v1299_v20 = vld [vmem:[#allocation1 + $0x217] sm:$0x4]   ;;  %v1366_v35 = vld [vmem:[#allocation1 + $0x18] sm:$0x1]   ;;  %v1422_v38 = vsel %vm659_vm4, %v1420_v32, %v1418_v31  ;;  %v1353_v42 = vsel %vm663_vm5, %v1351_v15, %v1349_v36  ;;  %513 = vst [vmem:[#allocation1 + $0xd0] sm:$0x3] %v2055_v58 }
  0x6e   :  { %v1303_v21 = vld [vmem:[#allocation1 + $0x316] sm:$0x8]   ;;  %v1368_v39 = vld [vmem:[#allocation1 + $0x117] sm:$0x2]   ;;  %v1426_v46 = vsel %vm663_vm5, %v1424_v33, %v1422_v38  ;;  %v1357_v49 = vsel %vm667_vm6, %v1355_v18, %v1353_v42  ;;  %553 = vst [vmem:[#allocation1 + $0x90] sm:$0x3] %v2063_v59 }
  0x6f   :  { %v1293_v24 = vld [vmem:[#allocation1 + $0x19] sm:$0x1]   ;;  %v1372_v40 = vld [vmem:[#allocation1 + $0x216] sm:$0x4]   ;;  %v1370_v47 = vsel %vm643_vm0, %v1368_v39, %v1366_v35  ;;  %1358 = vrot.lane.b32.xlu1 %v1357_v49, %s2107_s12  ;;  %v1430_v61 = vsel %vm667_vm6, %v1428_v34, %v1426_v46  ;;  %v1975_v2 = vld [vmem:[%s2762_s0 + $0xd4] sm:$0x3] }
  0x70   :  { %v1307_v25 = vld [vmem:[#allocation1 + $0x55] sm:$0x10]   ;;  %v1297_v30 = vsel %vm643_vm0, %v1295_v19, %v1293_v24  ;;  %v1376_v41 = vld [vmem:[#allocation1 + $0x315] sm:$0x8]   ;;  %v1374_v51 = vsel %vm647_vm1, %v1372_v40, %v1370_v47  ;;  %v1983_v3 = vld [vmem:[%s2762_s0 + $0xc4] sm:$0x3] }
  0x71   :  { %v1311_v26 = vld [vmem:[#allocation1 + $0x154] sm:$0x20]   ;;  %v1301_v37 = vsel %vm647_vm1, %v1299_v20, %v1297_v30  ;;  %v1380_v48 = vld [vmem:[#allocation1 + $0x54] sm:$0x10]   ;;  %v1378_v56 = vsel %vm651_vm2, %v1376_v41, %v1374_v51  ;;  %v2007_v4 = vld [vmem:[%s2762_s0 + $0x94] sm:$0x3] }
  0x72   :  { %v1305_v43 = vsel %vm651_vm2, %v1303_v21, %v1301_v37  ;;  %v1315_v44 = vld [vmem:[#allocation1 + $0x253] sm:$0x40]   ;;  %v1384_v52 = vld [vmem:[#allocation1 + $0x153] sm:$0x20]   ;;  %v1382_v62 = vsel %vm655_vm3, %v1380_v48, %v1378_v56  ;;  %113 = vst [vmem:[#allocation1 + $0x350] sm:$0x3] %v1975_v2 }
  0x73   :  { %v1319_v45 = vld [vmem:[#allocation1 + $0x352] sm:$0x80]   ;;  %v1309_v50 = vsel %vm655_vm3, %v1307_v25, %v1305_v43  ;;  %v1388_v57 = vld [vmem:[#allocation1 + $0x252] sm:$0x40]   ;;  %v1386_v1 = vsel %vm659_vm4, %v1384_v52, %v1382_v62  ;;  %153 = vst [vmem:[#allocation1 + $0x310] sm:$0x3] %v1983_v3 }
  0x74   :  { %v1313_v55 = vsel %vm659_vm4, %v1311_v26, %v1309_v50  ;;  %v1392_v63 = vld [vmem:[#allocation1 + $0x351] sm:$0x80]   ;;  %v1390_v5 = vsel %vm663_vm5, %v1388_v57, %v1386_v1  ;;  %273 = vst [vmem:[#allocation1 + $0x250] sm:$0x3] %v2007_v4  ;;  %v2015_v6 = vld [vmem:[%s2762_s0 + $0x84] sm:$0x3] }
  0x75   :  { %v1317_v60 = vsel %vm663_vm5, %v1315_v44, %v1313_v55  ;;  %v2039_v7 = vld [vmem:[%s2762_s0 + $0x54] sm:$0x3]  ;;  %v2047_v8 = vld [vmem:[%s2762_s0 + $0x44] sm:$0x3]  ;;  %s2108_s29 = smov 48   ;;  %v1394_v9 = vsel %vm667_vm6, %v1392_v63, %v1390_v5  ;;  %s2109_s15 = smov 40  }
  0x76   :  { %v1321_v0 = vsel %vm667_vm6, %v1319_v45, %v1317_v60  ;;  %1431 = vrot.lane.b32.xlu1 %v1430_v61, %s2108_s29  ;;  %313 = vst [vmem:[#allocation1 + $0x210] sm:$0x3] %v2015_v6  ;;  %433 = vst [vmem:[#allocation1 + $0x150] sm:$0x3] %v2039_v7  ;;  %v2071_v10 = vld [vmem:[%s2762_s0 + $0x14] sm:$0x3] }
  0x77   :  { %1322 = vrot.lane.b32.xlu0 %v1321_v0, %s2107_s12  ;;  %473 = vst [vmem:[#allocation1 + $0x110] sm:$0x3] %v2047_v8  ;;  %v2079_v11 = vld [vmem:[%s2762_s0 + $0x4] sm:$0x3]  ;;  %v1481_v12 = vld [vmem:[#allocation1 + $0x28f] sm:$0x4]  }
  0x78   :  { %593 = vst [vmem:[#allocation1 + $0x50] sm:$0x3] %v2071_v10  ;;  %633 = vst [vmem:[#allocation1 + $0x10] sm:$0x3] %v2079_v11  ;;  %v1485_v13 = vld [vmem:[#allocation1 + $0x38e] sm:$0x8]  }
  0x79   :  { %v1960_v14 = vld [vmem:[%s2762_s0 + $0xf2] sm:$0x3]  ;;  %v1968_v15 = vld [vmem:[%s2762_s0 + $0xe2] sm:$0x3]  ;;  %v1477_v16 = vld [vmem:[#allocation1 + $0x190] sm:$0x2]  }
  0x7a   :  { %v1550_v17 = vld [vmem:[#allocation1 + $0x18f] sm:$0x2]   ;;  %38 = vst [vmem:[#allocation1 + $0x3c8] sm:$0x3] %v1960_v14  ;;  %78 = vst [vmem:[#allocation1 + $0x388] sm:$0x3] %v1968_v15 }
  0x7b   :  { %1395 = vrot.lane.b32.xlu0 %v1394_v9, %s2108_s29  ;;  %v1554_v18 = vld [vmem:[#allocation1 + $0x28e] sm:$0x4]   ;;  %v1475_v19 = vld [vmem:[#allocation1 + $0x91] sm:$0x1]   ;;  %v1992_v27 = vld [vmem:[%s2762_s0 + $0xb2] sm:$0x3] }
  0x7c   :  { %v1548_v20 = vld [vmem:[#allocation1 + $0x90] sm:$0x1]   ;;  %v1479_v22 = vsel %vm643_vm0, %v1477_v16, %v1475_v19  ;;  %v1489_v23 = vld [vmem:[#allocation1 + $0xcd] sm:$0x10]   ;;  %198 = vst [vmem:[#allocation1 + $0x2c8] sm:$0x3] %v1992_v27 }
  0x7d   :  { %v1558_v21 = vld [vmem:[#allocation1 + $0x38d] sm:$0x8]   ;;  %v1497_v24 = vld [vmem:[#allocation1 + $0x2cb] sm:$0x40]   ;;  %v1552_v25 = vsel %vm643_vm0, %v1550_v17, %v1548_v20  ;;  %v1483_v28 = vsel %vm647_vm1, %v1481_v12, %v1479_v22  ;;  %v2000_v0 = vld [vmem:[%s2762_s0 + $0xa2] sm:$0x3] }
  0x7e   :  { %v1562_v26 = vld [vmem:[#allocation1 + $0xcc] sm:$0x10]   ;;  %v1493_v29 = vld [vmem:[#allocation1 + $0x1cc] sm:$0x20]   ;;  %v1556_v31 = vsel %vm647_vm1, %v1554_v18, %v1552_v25  ;;  %v1487_v34 = vsel %vm651_vm2, %v1485_v13, %v1483_v28  ;;  %v2024_v1 = vld [vmem:[%s2762_s0 + $0x72] sm:$0x3] }
  0x7f   :  { %v1501_v30 = vld [vmem:[#allocation1 + $0x3ca] sm:$0x80]   ;;  %v1566_v32 = vld [vmem:[#allocation1 + $0x1cb] sm:$0x20]   ;;  %v1560_v38 = vsel %vm651_vm2, %v1558_v21, %v1556_v31  ;;  %v1491_v39 = vsel %vm655_vm3, %v1489_v23, %v1487_v34  ;;  %238 = vst [vmem:[#allocation1 + $0x288] sm:$0x3] %v2000_v0 }
  0x80   :  { %v1570_v33 = vld [vmem:[#allocation1 + $0x2ca] sm:$0x40]   ;;  %v1441_v35 = vld [vmem:[#allocation1 + $0x110] sm:$0x2]   ;;  %v1564_v42 = vsel %vm655_vm3, %v1562_v26, %v1560_v38  ;;  %v1495_v45 = vsel %vm659_vm4, %v1493_v29, %v1491_v39  ;;  %358 = vst [vmem:[#allocation1 + $0x1c8] sm:$0x3] %v2024_v1 }
  0x81   :  { %v1445_v36 = vld [vmem:[#allocation1 + $0x20f] sm:$0x4]   ;;  %v1574_v43 = vld [vmem:[#allocation1 + $0x3c9] sm:$0x80]   ;;  %v1568_v48 = vsel %vm659_vm4, %v1566_v32, %v1564_v42  ;;  %v1499_v52 = vsel %vm663_vm5, %v1497_v24, %v1495_v45  ;;  %v2032_v4 = vld [vmem:[%s2762_s0 + $0x62] sm:$0x3] }
  0x82   :  { %v1449_v37 = vld [vmem:[#allocation1 + $0x30e] sm:$0x8]   ;;  %v1512_v44 = vld [vmem:[#allocation1 + $0x10] sm:$0x1]   ;;  %v1572_v56 = vsel %vm663_vm5, %v1570_v33, %v1568_v48  ;;  %v1503_v60 = vsel %vm667_vm6, %v1501_v30, %v1499_v52  ;;  %v2056_v5 = vld [vmem:[%s2762_s0 + $0x32] sm:$0x3] }
  0x83   :  { %v1439_v40 = vld [vmem:[#allocation1 + $0x11] sm:$0x1]   ;;  %v1514_v49 = vld [vmem:[#allocation1 + $0x10f] sm:$0x2]   ;;  %1504 = vrot.lane.b32.xlu1 %v1503_v60, %s2109_s15  ;;  %v2064_v6 = vld [vmem:[%s2762_s0 + $0x22] sm:$0x3]  ;;  %v1576_v8 = vsel %vm667_vm6, %v1574_v43, %v1572_v56 }
  0x84   :  { %v1453_v41 = vld [vmem:[#allocation1 + $0x4d] sm:$0x10]   ;;  %v1443_v46 = vsel %vm643_vm0, %v1441_v35, %v1439_v40  ;;  %v1518_v50 = vld [vmem:[#allocation1 + $0x20e] sm:$0x4]   ;;  %v1516_v57 = vsel %vm643_vm0, %v1514_v49, %v1512_v44  ;;  %398 = vst [vmem:[#allocation1 + $0x188] sm:$0x3] %v2032_v4 }
  0x85   :  { %v1461_v47 = vld [vmem:[#allocation1 + $0x24b] sm:$0x40]   ;;  %v1522_v51 = vld [vmem:[#allocation1 + $0x30d] sm:$0x8]   ;;  %v1447_v53 = vsel %vm647_vm1, %v1445_v36, %v1443_v46  ;;  %v1520_v62 = vsel %vm647_vm1, %v1518_v50, %v1516_v57  ;;  %518 = vst [vmem:[#allocation1 + $0xc8] sm:$0x3] %v2056_v5 }
  0x86   :  { %v1457_v54 = vld [vmem:[#allocation1 + $0x14c] sm:$0x20]   ;;  %v1526_v58 = vld [vmem:[#allocation1 + $0x4c] sm:$0x10]   ;;  %v1451_v61 = vsel %vm651_vm2, %v1449_v37, %v1447_v53  ;;  %v1524_v3 = vsel %vm651_vm2, %v1522_v51, %v1520_v62  ;;  %558 = vst [vmem:[#allocation1 + $0x88] sm:$0x3] %v2064_v6 }
  0x87   :  { %v1465_v55 = vld [vmem:[#allocation1 + $0x34a] sm:$0x80]   ;;  %v1530_v59 = vld [vmem:[#allocation1 + $0x14b] sm:$0x20]   ;;  %v1455_v2 = vsel %vm655_vm3, %v1453_v41, %v1451_v61  ;;  %v1528_v9 = vsel %vm655_vm3, %v1526_v58, %v1524_v3  ;;  %v1976_v13 = vld [vmem:[%s2762_s0 + $0xd2] sm:$0x3] }
  0x88   :  { %v1534_v63 = vld [vmem:[#allocation1 + $0x24a] sm:$0x40]   ;;  %v1459_v7 = vsel %vm659_vm4, %v1457_v54, %v1455_v2  ;;  %v1532_v12 = vsel %vm659_vm4, %v1530_v59, %v1528_v9  ;;  %v1984_v14 = vld [vmem:[%s2762_s0 + $0xc2] sm:$0x3]  ;;  %v2008_v15 = vld [vmem:[%s2762_s0 + $0x92] sm:$0x3] }
  0x89   :  { %v1538_v10 = vld [vmem:[#allocation1 + $0x349] sm:$0x80]   ;;  %v1463_v11 = vsel %vm663_vm5, %v1461_v47, %v1459_v7  ;;  %v1536_v17 = vsel %vm663_vm5, %v1534_v63, %v1532_v12  ;;  %118 = vst [vmem:[#allocation1 + $0x348] sm:$0x3] %v1976_v13  ;;  %158 = vst [vmem:[#allocation1 + $0x308] sm:$0x3] %v1984_v14 }
  0x8a   :  { %v1467_v16 = vsel %vm667_vm6, %v1465_v55, %v1463_v11  ;;  %278 = vst [vmem:[#allocation1 + $0x248] sm:$0x3] %v2008_v15  ;;  %v2016_v18 = vld [vmem:[%s2762_s0 + $0x82] sm:$0x3]  ;;  %v2040_v19 = vld [vmem:[%s2762_s0 + $0x52] sm:$0x3]  ;;  %v1540_v23 = vsel %vm667_vm6, %v1538_v10, %v1536_v17 }
  0x8b   :  { %v2048_v20 = vld [vmem:[%s2762_s0 + $0x42] sm:$0x3]  ;;  %1468 = vrot.lane.b32.xlu0 %v1467_v16, %s2109_s15  ;;  %s2110_s5 = smov 32   ;;  %318 = vst [vmem:[#allocation1 + $0x208] sm:$0x3] %v2016_v18  ;;  %s2111_s18 = smov 24  }
  0x8c   :  { %1577 = vrot.lane.b32.xlu1 %v1576_v8, %s2110_s5  ;;  %438 = vst [vmem:[#allocation1 + $0x148] sm:$0x3] %v2040_v19  ;;  %478 = vst [vmem:[#allocation1 + $0x108] sm:$0x3] %v2048_v20  ;;  %v2072_v21 = vld [vmem:[%s2762_s0 + $0x12] sm:$0x3] }
  0x8d   :  { %v2080_v22 = vld [vmem:[%s2762_s0 + $0x2] sm:$0x3]  ;;  %598 = vst [vmem:[#allocation1 + $0x48] sm:$0x3] %v2072_v21  ;;  %v1631_v24 = vld [vmem:[#allocation1 + $0x386] sm:$0x8]  }
  0x8e   :  { %637 = vst [vmem:[#allocation1 + $0x8] sm:$0x3] %v2080_v22  ;;  %v1961_v25 = vld [vmem:[%s2762_s0 + $0xf0] sm:$0x3]  ;;  %v1969_v26 = vld [vmem:[%s2762_s0 + $0xe0] sm:$0x3] }
  0x8f   :  { %v1977_v27 = vld [vmem:[%s2762_s0 + $0xd0] sm:$0x3]  ;;  %v1627_v28 = vld [vmem:[#allocation1 + $0x287] sm:$0x4]   ;;  %v1704_v29 = vld [vmem:[#allocation1 + $0x385] sm:$0x8]   ;;  %1541 = vrot.lane.b32.xlu0 %v1540_v23, %s2110_s5 }
  0x90   :  { %43 = vst [vmem:[#allocation1 + $0x3c0] sm:$0x3] %v1961_v25  ;;  %83 = vst [vmem:[#allocation1 + $0x380] sm:$0x3] %v1969_v26  ;;  %v1621_v30 = vld [vmem:[#allocation1 + $0x89] sm:$0x1]  }
  0x91   :  { %123 = vst [vmem:[#allocation1 + $0x340] sm:$0x3] %v1977_v27  ;;  %v1623_v31 = vld [vmem:[#allocation1 + $0x188] sm:$0x2]   ;;  %v1700_v32 = vld [vmem:[#allocation1 + $0x286] sm:$0x4]  }
  0x92   :  { %v1625_v33 = vsel %vm643_vm0, %v1623_v31, %v1621_v30  ;;  %v1635_v34 = vld [vmem:[#allocation1 + $0xc5] sm:$0x10]   ;;  %v1694_v36 = vld [vmem:[#allocation1 + $0x88] sm:$0x1]   ;;  %v1985_v12 = vld [vmem:[%s2762_s0 + $0xc0] sm:$0x3] }
  0x93   :  { %v1643_v35 = vld [vmem:[#allocation1 + $0x2c3] sm:$0x40]   ;;  %v1696_v37 = vld [vmem:[#allocation1 + $0x187] sm:$0x2]   ;;  %v1629_v38 = vsel %vm647_vm1, %v1627_v28, %v1625_v33  ;;  %163 = vst [vmem:[#allocation1 + $0x300] sm:$0x3] %v1985_v12 }
  0x94   :  { %v1639_v39 = vld [vmem:[#allocation1 + $0x1c4] sm:$0x20]   ;;  %v1698_v41 = vsel %vm643_vm0, %v1696_v37, %v1694_v36  ;;  %v1708_v42 = vld [vmem:[#allocation1 + $0xc4] sm:$0x10]   ;;  %v1633_v44 = vsel %vm651_vm2, %v1631_v24, %v1629_v38  ;;  %v1993_v16 = vld [vmem:[%s2762_s0 + $0xb0] sm:$0x3] }
  0x95   :  { %v1647_v40 = vld [vmem:[#allocation1 + $0x3c2] sm:$0x80]   ;;  %v1716_v43 = vld [vmem:[#allocation1 + $0x2c2] sm:$0x40]   ;;  %v1702_v48 = vsel %vm647_vm1, %v1700_v32, %v1698_v41  ;;  %v1637_v49 = vsel %vm655_vm3, %v1635_v34, %v1633_v44  ;;  %v2001_v17 = vld [vmem:[%s2762_s0 + $0xa0] sm:$0x3] }
  0x96   :  { %v1587_v45 = vld [vmem:[#allocation1 + $0x108] sm:$0x2]   ;;  %v1706_v52 = vsel %vm651_vm2, %v1704_v29, %v1702_v48  ;;  %v1712_v53 = vld [vmem:[#allocation1 + $0x1c3] sm:$0x20]   ;;  %v1641_v55 = vsel %vm659_vm4, %v1639_v39, %v1637_v49  ;;  %v2009_v18 = vld [vmem:[%s2762_s0 + $0x90] sm:$0x3] }
  0x97   :  { %v1591_v46 = vld [vmem:[#allocation1 + $0x207] sm:$0x4]   ;;  %v1720_v54 = vld [vmem:[#allocation1 + $0x3c1] sm:$0x80]   ;;  %v1710_v58 = vsel %vm655_vm3, %v1708_v42, %v1706_v52  ;;  %v1645_v62 = vsel %vm663_vm5, %v1643_v35, %v1641_v55  ;;  %203 = vst [vmem:[#allocation1 + $0x2c0] sm:$0x3] %v1993_v16 }
  0x98   :  { %v1595_v47 = vld [vmem:[#allocation1 + $0x306] sm:$0x8]   ;;  %v1658_v59 = vld [vmem:[#allocation1 + $0x8] sm:$0x1]   ;;  %v1714_v2 = vsel %vm659_vm4, %v1712_v53, %v1710_v58  ;;  %v1649_v6 = vsel %vm667_vm6, %v1647_v40, %v1645_v62  ;;  %243 = vst [vmem:[#allocation1 + $0x280] sm:$0x3] %v2001_v17 }
  0x99   :  { %v1585_v50 = vld [vmem:[#allocation1 + $0x9] sm:$0x1]   ;;  %v1660_v60 = vld [vmem:[#allocation1 + $0x107] sm:$0x2]   ;;  %v1718_v8 = vsel %vm663_vm5, %v1716_v43, %v1714_v2  ;;  %1650 = vrot.lane.b32.xlu1 %v1649_v6, %s2111_s18  ;;  %283 = vst [vmem:[#allocation1 + $0x240] sm:$0x3] %v2009_v18 }
  0x9a   :  { %v1599_v51 = vld [vmem:[#allocation1 + $0x45] sm:$0x10]   ;;  %v1589_v56 = vsel %vm643_vm0, %v1587_v45, %v1585_v50  ;;  %v1664_v61 = vld [vmem:[#allocation1 + $0x206] sm:$0x4]   ;;  %v1662_v3 = vsel %vm643_vm0, %v1660_v60, %v1658_v59  ;;  %v1722_v20 = vsel %vm667_vm6, %v1720_v54, %v1718_v8  ;;  %v2017_v22 = vld [vmem:[%s2762_s0 + $0x80] sm:$0x3] }
  0x9b   :  { %v1607_v57 = vld [vmem:[#allocation1 + $0x243] sm:$0x40]   ;;  %v1593_v63 = vsel %vm647_vm1, %v1591_v46, %v1589_v56  ;;  %v1668_v4 = vld [vmem:[#allocation1 + $0x305] sm:$0x8]   ;;  %v1666_v9 = vsel %vm647_vm1, %v1664_v61, %v1662_v3  ;;  %v2025_v23 = vld [vmem:[%s2762_s0 + $0x70] sm:$0x3] }
  0x9c   :  { %v1603_v0 = vld [vmem:[#allocation1 + $0x144] sm:$0x20]   ;;  %v1672_v5 = vld [vmem:[#allocation1 + $0x44] sm:$0x10]   ;;  %v1597_v7 = vsel %vm651_vm2, %v1595_v47, %v1593_v63  ;;  %v1670_v14 = vsel %vm651_vm2, %v1668_v4, %v1666_v9  ;;  %v2033_v24 = vld [vmem:[%s2762_s0 + $0x60] sm:$0x3] }
  0x9d   :  { %v1611_v1 = vld [vmem:[#allocation1 + $0x342] sm:$0x80]   ;;  %v1676_v10 = vld [vmem:[#allocation1 + $0x143] sm:$0x20]   ;;  %v1601_v13 = vsel %vm655_vm3, %v1599_v51, %v1597_v7  ;;  %v1674_v21 = vsel %vm655_vm3, %v1672_v5, %v1670_v14  ;;  %323 = vst [vmem:[#allocation1 + $0x200] sm:$0x3] %v2017_v22  ;;  %v739_v22 = vpop.permute.xlu0 %738  }
  0x9e   :  { %v1680_v11 = vld [vmem:[#allocation1 + $0x242] sm:$0x40]   ;;  %v1605_v19 = vsel %vm659_vm4, %v1603_v0, %v1601_v13  ;;  %v1678_v26 = vsel %vm659_vm4, %v1676_v10, %v1674_v21  ;;  %363 = vst [vmem:[#allocation1 + $0x1c0] sm:$0x3] %v2025_v23  ;;  %403 = vst [vmem:[#allocation1 + $0x180] sm:$0x3] %v2033_v24 }
  0x9f   :  { %v1684_v15 = vld [vmem:[#allocation1 + $0x341] sm:$0x80]   ;;  %v1609_v25 = vsel %vm663_vm5, %v1607_v57, %v1605_v19  ;;  %v2057_v27 = vld [vmem:[%s2762_s0 + $0x30] sm:$0x3]  ;;  %v2065_v28 = vld [vmem:[%s2762_s0 + $0x20] sm:$0x3]  ;;  %v1682_v31 = vsel %vm663_vm5, %v1680_v11, %v1678_v26 }
  0xa0   :  { %v2073_v29 = vld [vmem:[%s2762_s0 + $0x10] sm:$0x3]  ;;  %v1613_v30 = vsel %vm667_vm6, %v1611_v1, %v1609_v25  ;;  %523 = vst [vmem:[#allocation1 + $0xc0] sm:$0x3] %v2057_v27  ;;  %563 = vst [vmem:[#allocation1 + $0x80] sm:$0x3] %v2065_v28  ;;  %v1686_v33 = vsel %vm667_vm6, %v1684_v15, %v1682_v31  ;;  %v812_v15 = vpop.permute.xlu1 %811  }
  0xa1   :  { %603 = vst [vmem:[#allocation1 + $0x40] sm:$0x3] %v2073_v29  ;;  %v638_v32 = vld [vmem:[%s2762_s0] sm:$0x3]  ;;  %1614 = vrot.lane.b32.xlu0 %v1613_v30, %s2111_s18  ;;  %s2112_s10 = smov 16   ;;  %vm669_vm7 = vcmask 64512  }
  0xa2   :  { %1723 = vrot.lane.b32.xlu1 %v1722_v20, %s2112_s10  ;;  %639 = vst [vmem:[#allocation1] sm:$0x3] %v638_v32  ;;  %v2041_v34 = vld [vmem:[%s2762_s0 + $0x50] sm:$0x3]  ;;  %v2049_v35 = vld [vmem:[%s2762_s0 + $0x40] sm:$0x3] }
  0xa3   :  { %443 = vst [vmem:[#allocation1 + $0x140] sm:$0x3] %v2041_v34  ;;  %483 = vst [vmem:[#allocation1 + $0x100] sm:$0x3] %v2049_v35  ;;  %v676_v36 = vld [vmem:[#allocation1 + $0x23f] sm:$0x2]   ;;  %v775_v35 = vpop.permute.xlu0 %774  }
  0xa4   :  { %v680_v37 = vld [vmem:[#allocation1 + $0x27e] sm:$0x4]   ;;  %v1777_v43 = vld [vmem:[#allocation1 + $0x37e] sm:$0x8]   ;;  %vm740_vm8 = vcmask 1048512   ;;  %vm813_vm9 = vcmask 982912   ;;  %v848_v32 = vpop.permute.xlu1 %847  }
  0xa5   :  { %1687 = vrot.lane.b32.xlu0 %v1686_v33, %s2112_s10  ;;  %v688_v38 = vld [vmem:[#allocation1 + $0x2fc] sm:$0x10]   ;;  %v1769_v42 = vld [vmem:[#allocation1 + $0x180] sm:$0x2]   ;;  %s2113_s0 = smov 8   ;;  %vm886_vm10 = vcmask 917312  }
  0xa6   :  { %v674_v39 = vld [vmem:[#allocation1 + $0x200] sm:$0x1]   ;;  %v1773_v53 = vld [vmem:[#allocation1 + $0x27f] sm:$0x4]   ;;  %vm959_vm11 = vcmask 851712   ;;  %vm1032_vm12 = vcmask 786112  }
  0xa7   :  { %v684_v40 = vld [vmem:[#allocation1 + $0x2bd] sm:$0x8]   ;;  %v678_v47 = vsel %vm643_vm0, %v676_v36, %v674_v39  ;;  %v1767_v52 = vld [vmem:[#allocation1 + $0x81] sm:$0x1]   ;;  %vm1105_vm13 = vcmask 720512   ;;  %vm1178_vm14 = vcmask 654912  }
  0xa8   :  { %v692_v41 = vld [vmem:[#allocation1 + $0x33b] sm:$0x20]   ;;  %v682_v50 = vsel %vm647_vm1, %v680_v37, %v678_v47  ;;  %v1771_v56 = vsel %vm643_vm0, %v1769_v42, %v1767_v52  ;;  %v1781_v57 = vld [vmem:[#allocation1 + $0xbd] sm:$0x10]   ;;  %v921_v36 = vpop.permute.xlu1 %920   ;;  %v885_v37 = vpop.permute.xlu0 %884   ;;  %vm1251_vm15 = vcmask 589312  }
  0xa9   :  { %v642_v44 = vld [vmem:[#allocation1 + $0x3f] sm:$0x2]   ;;  %v686_v55 = vsel %vm651_vm2, %v684_v40, %v682_v50  ;;  %v1785_v58 = vld [vmem:[#allocation1 + $0x1bc] sm:$0x20]   ;;  %v1775_v62 = vsel %vm647_vm1, %v1773_v53, %v1771_v56 }
  0xaa   :  { %v646_v45 = vld [vmem:[#allocation1 + $0x7e] sm:$0x4]   ;;  %v1741_v59 = vld [vmem:[#allocation1 + $0x2fe] sm:$0x8]   ;;  %v690_v61 = vsel %vm655_vm3, %v688_v38, %v686_v55  ;;  %v1779_v5 = vsel %vm651_vm2, %v1777_v43, %v1775_v62 }
  0xab   :  { %v650_v46 = vld [vmem:[#allocation1 + $0xbd] sm:$0x8]   ;;  %v1793_v63 = vld [vmem:[#allocation1 + $0x3ba] sm:$0x80]   ;;  %v694_v4 = vsel %vm659_vm4, %v692_v41, %v690_v61  ;;  %v1783_v11 = vsel %vm655_vm3, %v1781_v57, %v1779_v5 }
  0xac   :  { %v696_v48 = vld [vmem:[#allocation1 + $0x37a] sm:$0x40]   ;;  %v1731_v2 = vld [vmem:[#allocation1 + $0x1] sm:$0x1]   ;;  %v1787_v18 = vsel %vm659_vm4, %v1785_v58, %v1783_v11  ;;  %v994_v38 = vpop.permute.xlu1 %993   ;;  %v958_v39 = vpop.permute.xlu0 %957  }
  0xad   :  { %v640_v49 = vld [vmem:[#allocation1] sm:$0x1]   ;;  %v1789_v6 = vld [vmem:[#allocation1 + $0x2bb] sm:$0x40]   ;;  %v698_v10 = vsel %vm663_vm5, %v696_v48, %v694_v4 }
  0xae   :  { %v700_v51 = vld [vmem:[#allocation1 + $0x3b9] sm:$0x80]   ;;  %v644_v54 = vsel %vm643_vm0, %v642_v44, %v640_v49  ;;  %v1733_v7 = vld [vmem:[#allocation1 + $0x100] sm:$0x2]   ;;  %v1791_v23 = vsel %vm663_vm5, %v1789_v6, %v1787_v18 }
  0xaf   :  { %v648_v60 = vsel %vm647_vm1, %v646_v45, %v644_v54  ;;  %v654_v0 = vld [vmem:[#allocation1 + $0xfc] sm:$0x10]   ;;  %v1737_v8 = vld [vmem:[#allocation1 + $0x1ff] sm:$0x4]   ;;  %v1735_v13 = vsel %vm643_vm0, %v1733_v7, %v1731_v2  ;;  %v702_v17 = vsel %vm667_vm6, %v700_v51, %v698_v10  ;;  %v1795_v27 = vsel %vm667_vm6, %v1793_v63, %v1791_v23 }
  0xb0   :  { %v658_v1 = vld [vmem:[#allocation1 + $0x13b] sm:$0x20]   ;;  %v652_v3 = vsel %vm651_vm2, %v650_v46, %v648_v60  ;;  %v1745_v14 = vld [vmem:[#allocation1 + $0x3d] sm:$0x10]   ;;  %v1739_v20 = vsel %vm647_vm1, %v1737_v8, %v1735_v13  ;;  %1796 = vrot.lane.b32.xlu1 %v1795_v27, %s2113_s0  ;;  %vm1324_vm0 = vcmask 523712   ;;  %vm1397_vm1 = vcmask 458112  }
  0xb1   :  { %v666_v9 = vld [vmem:[#allocation1 + $0x1b9] sm:$0x80]   ;;  %v656_v12 = vsel %vm655_vm3, %v654_v0, %v652_v3  ;;  %v1749_v21 = vld [vmem:[#allocation1 + $0x13c] sm:$0x20]   ;;  %v1743_v24 = vsel %vm651_vm2, %v1741_v59, %v1739_v20  ;;  %vm1470_vm2 = vcmask 392512  }
  0xb2   :  { %v662_v16 = vld [vmem:[#allocation1 + $0x17a] sm:$0x40]   ;;  %v660_v19 = vsel %vm659_vm4, %v658_v1, %v656_v12  ;;  %v1753_v25 = vld [vmem:[#allocation1 + $0x23b] sm:$0x40]   ;;  %v1747_v28 = vsel %vm655_vm3, %v1745_v14, %v1743_v24  ;;  %vm1543_vm3 = vcmask 326912  }
  0xb3   :  { %v664_v26 = vsel %vm663_vm5, %v662_v16, %v660_v19  ;;  %705 = vst.msk [vmem:[#allocation0 + $0x2] ss:$8 sm:$0xf] %vm669_vm7, %v702_v17   ;;  %707 = vst.msk [vmem:[#allocation0 - $0x1d] ss:$8 sm:$0xf0] %vm669_vm7, %v702_v17   ;;  %v1751_v31 = vsel %vm659_vm4, %v1749_v21, %v1747_v28 }
  0xb4   :  { %v1757_v29 = vld [vmem:[#allocation1 + $0x33a] sm:$0x80]   ;;  %v668_v30 = vsel %vm667_vm6, %v666_v9, %v664_v26  ;;  %v1755_v33 = vsel %vm663_vm5, %v1753_v25, %v1751_v31  ;;  %vm1616_vm4 = vcmask 261312   ;;  %vm1689_vm5 = vcmask 195712  }
  0xb5   :  { %670 = vst.msk [vmem:[#allocation0] ss:$8 sm:$0xf] %vm669_vm7, %v668_v30   ;;  %672 = vst.msk [vmem:[#allocation0 - $0x1f] ss:$8 sm:$0xf0] %vm669_vm7, %v668_v30   ;;  %v1759_v34 = vsel %vm667_vm6, %v1757_v29, %v1755_v33 }
  0xb6   :  { %741 = vst.msk [vmem:[#allocation0] sm:$0xf] %vm740_vm8, %v739_v22   ;;  %743 = vst.msk [vmem:[#allocation0 + $0x4] sm:$0xf0] %vm740_vm8, %v739_v22   ;;  %1760 = vrot.lane.b32.xlu0 %v1759_v34, %s2113_s0  ;;  %v1067_v40 = vpop.permute.xlu1 %1066   ;;  %vm1762_vm6 = vcmask 130112  }
  0xb7   :  { %814 = vst.msk [vmem:[#allocation0] sm:$0xf] %vm813_vm9, %v812_v15   ;;  %816 = vst.msk [vmem:[#allocation0 + $0x4] sm:$0xf0] %vm813_vm9, %v812_v15  }
  0xb8   :  { %778 = vst.msk [vmem:[#allocation0 + $0x10] sm:$0xf] %vm740_vm8, %v775_v35   ;;  %780 = vst.msk [vmem:[#allocation0 + $0x14] sm:$0xf0] %vm740_vm8, %v775_v35  }
  0xb9   :  { %851 = vst.msk [vmem:[#allocation0 + $0x10] sm:$0xf] %vm813_vm9, %v848_v32   ;;  %853 = vst.msk [vmem:[#allocation0 + $0x14] sm:$0xf0] %vm813_vm9, %v848_v32  }
  0xba   :  { %924 = vst.msk [vmem:[#allocation0 + $0x10] sm:$0xf] %vm886_vm10, %v921_v36   ;;  %926 = vst.msk [vmem:[#allocation0 + $0x14] sm:$0xf0] %vm886_vm10, %v921_v36   ;;  %v1140_v42 = vpop.permute.xlu1 %1139  }
  0xbb   :  { %887 = vst.msk [vmem:[#allocation0] sm:$0xf] %vm886_vm10, %v885_v37   ;;  %889 = vst.msk [vmem:[#allocation0 + $0x4] sm:$0xf0] %vm886_vm10, %v885_v37  }
  0xbc   :  { %997 = vst.msk [vmem:[#allocation0 + $0x10] sm:$0xf] %vm959_vm11, %v994_v38   ;;  %999 = vst.msk [vmem:[#allocation0 + $0x14] sm:$0xf0] %vm959_vm11, %v994_v38  }
  0xbd   :  { %960 = vst.msk [vmem:[#allocation0] sm:$0xf] %vm959_vm11, %v958_v39   ;;  %962 = vst.msk [vmem:[#allocation0 + $0x4] sm:$0xf0] %vm959_vm11, %v958_v39  }
  0xbe   :  { %1070 = vst.msk [vmem:[#allocation0 + $0x10] sm:$0xf] %vm1032_vm12, %v1067_v40   ;;  %1072 = vst.msk [vmem:[#allocation0 + $0x14] sm:$0xf0] %vm1032_vm12, %v1067_v40  }
  0xbf   :  { %v1031_v41 = vpop.permute.xlu0 %1030   ;;  %1143 = vst.msk [vmem:[#allocation0 + $0x10] sm:$0xf] %vm1105_vm13, %v1140_v42   ;;  %1145 = vst.msk [vmem:[#allocation0 + $0x14] sm:$0xf0] %vm1105_vm13, %v1140_v42  }
  0xc0   :  { %1033 = vst.msk [vmem:[#allocation0] sm:$0xf] %vm1032_vm12, %v1031_v41   ;;  %1035 = vst.msk [vmem:[#allocation0 + $0x4] sm:$0xf0] %vm1032_vm12, %v1031_v41  }
  0xc3   :  { %v1104_v43 = vpop.permute.xlu0 %1103  }
  0xc4   :  { %1106 = vst.msk [vmem:[#allocation0] sm:$0xf] %vm1105_vm13, %v1104_v43   ;;  %1108 = vst.msk [vmem:[#allocation0 + $0x4] sm:$0xf0] %vm1105_vm13, %v1104_v43  }
  0xcc   :  { %v1213_v44 = vpop.permute.xlu1 %1212  }
  0xcd   :  { %1216 = vst.msk [vmem:[#allocation0 + $0x10] sm:$0xf] %vm1178_vm14, %v1213_v44   ;;  %1218 = vst.msk [vmem:[#allocation0 + $0x14] sm:$0xf0] %vm1178_vm14, %v1213_v44  }
  0xd1   :  { %v1177_v46 = vpop.permute.xlu0 %1176  }
  0xd2   :  { %1179 = vst.msk [vmem:[#allocation0] sm:$0xf] %vm1178_vm14, %v1177_v46   ;;  %1181 = vst.msk [vmem:[#allocation0 + $0x4] sm:$0xf0] %vm1178_vm14, %v1177_v46  }
  0xd3   :  { %v1286_v45 = vpop.permute.xlu1 %1285  }
  0xd4   :  { %1289 = vst.msk [vmem:[#allocation0 + $0x10] sm:$0xf] %vm1251_vm15, %v1286_v45   ;;  %1291 = vst.msk [vmem:[#allocation0 + $0x14] sm:$0xf0] %vm1251_vm15, %v1286_v45  }
  0xd5   :  { %v1250_v47 = vpop.permute.xlu0 %1249  }
  0xd6   :  { %1252 = vst.msk [vmem:[#allocation0] sm:$0xf] %vm1251_vm15, %v1250_v47   ;;  %1254 = vst.msk [vmem:[#allocation0 + $0x4] sm:$0xf0] %vm1251_vm15, %v1250_v47  }
  0xe1   :  { %v1359_v48 = vpop.permute.xlu1 %1358  }
  0xe2   :  { %1362 = vst.msk [vmem:[#allocation0 + $0x10] sm:$0xf] %vm1324_vm0, %v1359_v48   ;;  %1364 = vst.msk [vmem:[#allocation0 + $0x14] sm:$0xf0] %vm1324_vm0, %v1359_v48  }
  0xe8   :  { %v1432_v50 = vpop.permute.xlu1 %1431  }
  0xe9   :  { %v1323_v49 = vpop.permute.xlu0 %1322   ;;  %1435 = vst.msk [vmem:[#allocation0 + $0x10] sm:$0xf] %vm1397_vm1, %v1432_v50   ;;  %1437 = vst.msk [vmem:[#allocation0 + $0x14] sm:$0xf0] %vm1397_vm1, %v1432_v50  }
  0xea   :  { %1325 = vst.msk [vmem:[#allocation0] sm:$0xf] %vm1324_vm0, %v1323_v49   ;;  %1327 = vst.msk [vmem:[#allocation0 + $0x4] sm:$0xf0] %vm1324_vm0, %v1323_v49  }
  0xed   :  { %v1396_v51 = vpop.permute.xlu0 %1395  }
  0xee   :  { %1398 = vst.msk [vmem:[#allocation0] sm:$0xf] %vm1397_vm1, %v1396_v51   ;;  %1400 = vst.msk [vmem:[#allocation0 + $0x4] sm:$0xf0] %vm1397_vm1, %v1396_v51  }
  0xf5   :  { %v1505_v52 = vpop.permute.xlu1 %1504  }
  0xf6   :  { %1508 = vst.msk [vmem:[#allocation0 + $0x10] sm:$0xf] %vm1470_vm2, %v1505_v52   ;;  %1510 = vst.msk [vmem:[#allocation0 + $0x14] sm:$0xf0] %vm1470_vm2, %v1505_v52  }
  0xfd   :  { %v1469_v53 = vpop.permute.xlu0 %1468  }
  0xfe   :  { %v1578_v54 = vpop.permute.xlu1 %1577   ;;  %1471 = vst.msk [vmem:[#allocation0] sm:$0xf] %vm1470_vm2, %v1469_v53   ;;  %1473 = vst.msk [vmem:[#allocation0 + $0x4] sm:$0xf0] %vm1470_vm2, %v1469_v53  }
  0xff   :  { %1581 = vst.msk [vmem:[#allocation0 + $0x10] sm:$0xf] %vm1543_vm3, %v1578_v54   ;;  %1583 = vst.msk [vmem:[#allocation0 + $0x14] sm:$0xf0] %vm1543_vm3, %v1578_v54  }
 0x101   :  { %v1542_v55 = vpop.permute.xlu0 %1541  }
 0x102   :  { %1544 = vst.msk [vmem:[#allocation0] sm:$0xf] %vm1543_vm3, %v1542_v55   ;;  %1546 = vst.msk [vmem:[#allocation0 + $0x4] sm:$0xf0] %vm1543_vm3, %v1542_v55  }
 0x10b   :  { %v1651_v56 = vpop.permute.xlu1 %1650  }
 0x10c   :  { %1654 = vst.msk [vmem:[#allocation0 + $0x10] sm:$0xf] %vm1616_vm4, %v1651_v56   ;;  %1656 = vst.msk [vmem:[#allocation0 + $0x14] sm:$0xf0] %vm1616_vm4, %v1651_v56  }
 0x113   :  { %v1615_v57 = vpop.permute.xlu0 %1614  }
 0x114   :  { %v1724_v58 = vpop.permute.xlu1 %1723   ;;  %1617 = vst.msk [vmem:[#allocation0] sm:$0xf] %vm1616_vm4, %v1615_v57   ;;  %1619 = vst.msk [vmem:[#allocation0 + $0x4] sm:$0xf0] %vm1616_vm4, %v1615_v57  }
 0x115   :  { %1727 = vst.msk [vmem:[#allocation0 + $0x10] sm:$0xf] %vm1689_vm5, %v1724_v58   ;;  %1729 = vst.msk [vmem:[#allocation0 + $0x14] sm:$0xf0] %vm1689_vm5, %v1724_v58  }
 0x117   :  { %v1688_v59 = vpop.permute.xlu0 %1687  }
 0x118   :  { %1690 = vst.msk [vmem:[#allocation0] sm:$0xf] %vm1689_vm5, %v1688_v59   ;;  %1692 = vst.msk [vmem:[#allocation0 + $0x4] sm:$0xf0] %vm1689_vm5, %v1688_v59  }
 0x122   :  { %v1797_v60 = vpop.permute.xlu1 %1796  }
 0x123   :  { %1800 = vst.msk [vmem:[#allocation0 + $0x10] sm:$0xf] %vm1762_vm6, %v1797_v60   ;;  %1802 = vst.msk [vmem:[#allocation0 + $0x14] sm:$0xf0] %vm1762_vm6, %v1797_v60  }
 0x128   :  { %v1761_v61 = vpop.permute.xlu0 %1760  }
 0x129   :  { %1763 = vst.msk [vmem:[#allocation0] sm:$0xf] %vm1762_vm6, %v1761_v61   ;;  %1765 = vst.msk [vmem:[#allocation0 + $0x4] sm:$0xf0] %vm1762_vm6, %v1761_v61  }
 0x12a   :  { %v1815_v62 = vld [vmem:[#allocation0 + $0x10] sm:$0xf]  ;;  %v1821_v63 = vld [vmem:[#allocation0 + $0x18] sm:$0xf] }
 0x12b   :  { %2082 = vst [vmem:[%s2763_s1 + $0x8] sm:$0xf] %v1815_v62  ;;  %2083 = vst [vmem:[%s2763_s1 + $0xc] sm:$0xf] %v1821_v63 }
 0x130   :  { %v1806_v0 = vld [vmem:[#allocation0] sm:$0xf]  ;;  %v1810_v1 = vld [vmem:[#allocation0 + $0x8] sm:$0xf] }
 0x131   :  { %1808 = vst [vmem:[%s2763_s1] sm:$0xf] %v1806_v0  ;;  %2081 = vst [vmem:[%s2763_s1 + $0x4] sm:$0xf] %v1810_v1 }

// kernel: reverse.2
= control target key start
LH: loop header
LB: loop body
LE: loop exit
PB: predicated region body
PF: predicated region fallthrough
CT: control target
= control target key end

     0   :  { %v71_v3 = vlaneseq  ;;  %v64_v9 = vld [vmem:[#allocation0 + $0x7] ss:$-1 sm:$0xff]  ;;  %v78_v12 = vld [vmem:[#allocation0 + $0x17] ss:$-1 sm:$0xff]  ;;  %s329_s0 = inlined_call_operand.vmem [shape: f32[4,2,16,7], index: 0, kind: input, shape index: {}]   ;;  %s330_s1 = inlined_call_operand.vmem [shape: f32[4,2,16,7], index: 1, kind: output, shape index: {}]  }
   0x1   :  { %v44_v0 = vld [vmem:[%s329_s0] sm:$0xff]  ;;  %v46_v1 = vld [vmem:[%s329_s0 + $0x8] sm:$0xff]  ;;  %v48_v2 = vld [vmem:[%s329_s0 + $0x10] sm:$0xff]  ;;  %v65_v10 = vrot.slane %v64_v9, 1  ;;  %v79_v14 = vrot.slane %v78_v12, 1 }
   0x2   :  { %45 = vst [vmem:[#allocation0 + $0x8] sm:$0xff] %v44_v0  ;;  %47 = vst [vmem:[#allocation0 + $0x18] sm:$0xff] %v46_v1  ;;  %v50_v4 = vld [vmem:[%s329_s0 + $0x18] sm:$0xff]  ;;  %v52_v5 = vld [vmem:[%s329_s0 + $0x20] sm:$0xff]  ;;  %v72_v11 = vshrl.u32 %v71_v3, 7 }
   0x3   :  { %49 = vst [vmem:[#allocation0 + $0x28] sm:$0xff] %v48_v2  ;;  %v54_v6 = vld [vmem:[%s329_s0 + $0x28] sm:$0xff]  ;;  %51 = vst [vmem:[#allocation0 + $0x38] sm:$0xff] %v50_v4  ;;  %v56_v7 = vld [vmem:[%s329_s0 + $0x30] sm:$0xff] }
   0x4   :  { %53 = vst [vmem:[#allocation0 + $0x48] sm:$0xff] %v52_v5  ;;  %55 = vst [vmem:[#allocation0 + $0x58] sm:$0xff] %v54_v6  ;;  %v58_v8 = vld [vmem:[%s329_s0 + $0x38] sm:$0xff]  ;;  %v92_v13 = vld [vmem:[#allocation0 + $0x27] ss:$-1 sm:$0xff]  ;;  %vm73_vm0 = vcmp.lt.s32.totalorder %v72_v11, 7 }
   0x5   :  { %57 = vst [vmem:[#allocation0 + $0x68] sm:$0xff] %v56_v7  ;;  %59 = vst [vmem:[#allocation0 + $0x78] sm:$0xff] %v58_v8  ;;  %v93_v15 = vrot.slane %v92_v13, 1  ;;  %v106_v16 = vld [vmem:[#allocation0 + $0x37] ss:$-1 sm:$0xff] }
   0x6   :  { %66 = vst [vmem:[#allocation1] sm:$0xff] %v65_v10  ;;  %v107_v17 = vrot.slane %v106_v16, 1  ;;  %v120_v18 = vld [vmem:[#allocation0 + $0x47] ss:$-1 sm:$0xff]  ;;  %v134_v19 = vld [vmem:[#allocation0 + $0x57] ss:$-1 sm:$0xff] }
   0x7   :  { %80 = vst [vmem:[#allocation1 + $0x8] sm:$0xff] %v79_v14  ;;  %94 = vst [vmem:[#allocation1 + $0x10] sm:$0xff] %v93_v15  ;;  %v121_v20 = vrot.slane %v120_v18, 1  ;;  %v135_v21 = vrot.slane %v134_v19, 1  ;;  %v148_v22 = vld [vmem:[#allocation0 + $0x67] ss:$-1 sm:$0xff] }
   0x8   :  { %v162_v23 = vld [vmem:[#allocation0 + $0x77] ss:$-1 sm:$0xff]  ;;  %108 = vst [vmem:[#allocation1 + $0x18] sm:$0xff] %v107_v17  ;;  %v149_v24 = vrot.slane %v148_v22, 1 }
   0x9   :  { %v163_v25 = vrot.slane %v162_v23, 1  ;;  %v69_v26 = vld [vmem:[#allocation0 + $0xf] ss:$-1 sm:$0xff]  ;;  %v83_v27 = vld [vmem:[#allocation0 + $0x1f] ss:$-1 sm:$0xff]  ;;  %122 = vst [vmem:[#allocation1 + $0x20] sm:$0xff] %v121_v20 }
   0xa   :  { %v97_v28 = vld [vmem:[#allocation0 + $0x2f] ss:$-1 sm:$0xff]  ;;  %136 = vst [vmem:[#allocation1 + $0x28] sm:$0xff] %v135_v21  ;;  %v70_v29 = vrot.slane %v69_v26, 1  ;;  %v84_v30 = vrot.slane %v83_v27, 1  ;;  %150 = vst [vmem:[#allocation1 + $0x30] sm:$0xff] %v149_v24 }
   0xb   :  { %v98_v31 = vrot.slane %v97_v28, 1  ;;  %v111_v32 = vld [vmem:[#allocation0 + $0x3f] ss:$-1 sm:$0xff]  ;;  %164 = vst [vmem:[#allocation1 + $0x38] sm:$0xff] %v163_v25  ;;  %v125_v34 = vld [vmem:[#allocation0 + $0x4f] ss:$-1 sm:$0xff] }
   0xc   :  { %v112_v33 = vrot.slane %v111_v32, 1  ;;  %v139_v35 = vld [vmem:[#allocation0 + $0x5f] ss:$-1 sm:$0xff]  ;;  %74 = vst.msk [vmem:[#allocation1] sm:$0xff] %vm73_vm0, %v70_v29  ;;  %88 = vst.msk [vmem:[#allocation1 + $0x8] sm:$0xff] %vm73_vm0, %v84_v30  ;;  %v126_v36 = vrot.slane %v125_v34, 1 }
   0xd   :  { %102 = vst.msk [vmem:[#allocation1 + $0x10] sm:$0xff] %vm73_vm0, %v98_v31  ;;  %v140_v37 = vrot.slane %v139_v35, 1  ;;  %v153_v38 = vld [vmem:[#allocation0 + $0x6f] ss:$-1 sm:$0xff]  ;;  %v167_v39 = vld [vmem:[#allocation0 + $0x7f] ss:$-1 sm:$0xff] }
   0xe   :  { %116 = vst.msk [vmem:[#allocation1 + $0x18] sm:$0xff] %vm73_vm0, %v112_v33  ;;  %v154_v40 = vrot.slane %v153_v38, 1  ;;  %v168_v41 = vrot.slane %v167_v39, 1  ;;  %130 = vst.msk [vmem:[#allocation1 + $0x20] sm:$0xff] %vm73_vm0, %v126_v36 }
   0xf   :  { %144 = vst.msk [vmem:[#allocation1 + $0x28] sm:$0xff] %vm73_vm0, %v140_v37 }
  0x10   :  { %158 = vst.msk [vmem:[#allocation1 + $0x30] sm:$0xff] %vm73_vm0, %v154_v40  ;;  %172 = vst.msk [vmem:[#allocation1 + $0x38] sm:$0xff] %vm73_vm0, %v168_v41 }
  0x13   :  { %v214_v42 = vld [vmem:[#allocation1] sm:$0xff]  ;;  %v216_v43 = vld [vmem:[#allocation1 + $0x8] sm:$0xff] }
  0x14   :  { %v218_v44 = vld [vmem:[#allocation1 + $0x10] sm:$0xff]  ;;  %215 = vst [vmem:[%s330_s1] sm:$0xff] %v214_v42  ;;  %217 = vst [vmem:[%s330_s1 + $0x8] sm:$0xff] %v216_v43 }
  0x15   :  { %219 = vst [vmem:[%s330_s1 + $0x10] sm:$0xff] %v218_v44  ;;  %v220_v45 = vld [vmem:[#allocation1 + $0x18] sm:$0xff]  ;;  %v222_v46 = vld [vmem:[#allocation1 + $0x20] sm:$0xff] }
  0x16   :  { %221 = vst [vmem:[%s330_s1 + $0x18] sm:$0xff] %v220_v45  ;;  %v224_v47 = vld [vmem:[#allocation1 + $0x28] sm:$0xff]  ;;  %223 = vst [vmem:[%s330_s1 + $0x20] sm:$0xff] %v222_v46 }
  0x17   :  { %225 = vst [vmem:[%s330_s1 + $0x28] sm:$0xff] %v224_v47  ;;  %v226_v48 = vld [vmem:[#allocation1 + $0x30] sm:$0xff]  ;;  %v228_v49 = vld [vmem:[#allocation1 + $0x38] sm:$0xff] }
  0x18   :  { %227 = vst [vmem:[%s330_s1 + $0x30] sm:$0xff] %v226_v48  ;;  %229 = vst [vmem:[%s330_s1 + $0x38] sm:$0xff] %v228_v49 }

// kernel: ffc_forward.5
= control target key start
LH: loop header
LB: loop body
LE: loop exit
PB: predicated region body
PF: predicated region fallthrough
CT: control target
= control target key end

     0   :  { %v162_v3 = vmov 0   ;;  %vm46_vm0 = vcmask 1041408   ;;  %vm42_vm1 = vcmask 31744   ;;  %s238_s0 = inlined_call_operand.vmem [shape: f32[4,512], index: 0, kind: input, shape index: {}]   ;;  %s239_s1 = inlined_call_operand.vmem [shape: f32[4,512], index: 1, kind: input, shape index: {}]   ;;  %s240_s2 = inlined_call_operand.vmem [shape: f32[4,512], index: 2, kind: input, shape index: {}]   ;;  %s241_s4 = inlined_call_operand.vmem [shape: bf16[8,4], index: 4, kind: input, shape index: {}]   ;;  %s242_s3 = inlined_call_operand.vmem [shape: f32[8,512], index: 3, kind: input, shape index: {}]   ;;  %s243_s5 = inlined_call_operand.vmem [shape: f32[8,512], index: 5, kind: output, shape index: {}]  }
   0x1   :  { %v21_v0 = vld [vmem:[%s238_s0] sm:$0xff]  ;;  %91 = vmatprep.mubr.bf16.mxu0 %v162_v3  ;;  %132 = vmatprep.mubr.bf16.mxu1 %v162_v3  ;;  %v22_v5 = vld [vmem:[%s238_s0 + $0x8] sm:$0xff]  ;;  %v143_v21 = vld [vmem:[%s242_s3 + $0x10] sm:$0xff] }
   0x2   :  { %v23_v1 = vld [vmem:[%s239_s1] sm:$0xff]  ;;  %v24_v6 = vld [vmem:[%s239_s1 + $0x8] sm:$0xff]  ;;  %v144_v24 = vld [vmem:[%s242_s3 + $0x18] sm:$0xff] }
   0x3   :  { %v27_v2 = vld [vmem:[%s240_s2] sm:$0xff]  ;;  %v25_v4 = vadd.f32 %v23_v1, %v21_v0  ;;  %v28_v7 = vld [vmem:[%s240_s2 + $0x8] sm:$0xff]  ;;  %v26_v8 = vadd.f32 %v24_v6, %v22_v5 }
   0x4   :  { %v41_v19 = vld [vmem:[%s241_s4] sm:$0xf]  ;;  %v142_v22 = vld [vmem:[%s242_s3 + $0x8] sm:$0xff] }
   0x5   :  { %v29_v9 = vadd.f32 %v27_v2, %v25_v4  ;;  %v30_v10 = vadd.f32 %v28_v7, %v26_v8  ;;  %v141_v20 = vld [vmem:[%s242_s3] sm:$0xff] }
   0x7   :  { %v33_v11 = vcombine.high %v29_v9, %v29_v9  ;;  %v37_v12 = vpack.c.bf16 %v29_v9, %v29_v9  ;;  %v34_v13 = vcombine.high %v30_v10, %v30_v10  ;;  %v39_v14 = vpack.c.bf16 %v30_v10, %v30_v10 }
   0x9   :  { %v38_v15 = vpack.c.bf16 %v33_v11, %v33_v11  ;;  %v48_v16 = vsel %vm46_vm0, %v37_v12, 0  ;;  %v40_v17 = vpack.c.bf16 %v34_v13, %v34_v13  ;;  %v54_v18 = vsel %vm46_vm0, %v39_v14, 0 }
   0xb   :  { %157 = vmatprep.subr.msk.bf16.mxu0 %vm46_vm0, %v38_v15  ;;  %159 = vmatprep.subr.msk.bf16.mxu1 %vm46_vm0, %v40_v17 }
   0xc   :  { %60 = vmatpush1.bf16.msra.mxu0 %v48_v16  ;;  %101 = vmatpush1.bf16.msra.mxu1 %v54_v18 }
   0xf   :  { %158 = vmatmul.mubr.msk.bf16.vlgmr.msra.gmra.mrb[0].mxu0 %vm42_vm1, %v41_v19  ;;  %160 = vmatmul.mubr.msk.bf16.vlgmr.msra.gmra.mrb[0].mxu1 %vm42_vm1, %v41_v19 }
  0xe2   :  { %v93_v23 = vpop.f32.mrb[0].mxu0  ;;  %v134_v26 = vpop.f32.mrb[0].mxu1 }
  0xe3   :  { %v145_v25 = vadd.f32 %v141_v20, %v93_v23  ;;  %v95_v27 = vpop.f32.mrb[1].mxu0  ;;  %v147_v28 = vadd.f32 %v143_v21, %v134_v26  ;;  %v136_v30 = vpop.f32.mrb[1].mxu1 }
  0xe4   :  { %v146_v29 = vadd.f32 %v142_v22, %v95_v27  ;;  %v97_v31 = vpop.f32.mrb[2].mxu0  ;;  %v148_v32 = vadd.f32 %v144_v24, %v136_v30  ;;  %v138_v33 = vpop.f32.mrb[2].mxu1 }
  0xe5   :  { %149 = vst [vmem:[%s243_s5] sm:$0xff] %v145_v25  ;;  %v98_v34 = vpop.f32.mrb[3].mxu0  ;;  %151 = vst [vmem:[%s243_s5 + $0x10] sm:$0xff] %v147_v28  ;;  %v139_v35 = vpop.f32.mrb[3].mxu1 }
  0xe6   :  { %150 = vst [vmem:[%s243_s5 + $0x8] sm:$0xff] %v146_v29  ;;  %152 = vst [vmem:[%s243_s5 + $0x18] sm:$0xff] %v148_v32 }

</bundles_post_ra>
